<compile_context>
chip_gen: v7x
topology: tpu7x:2x2x1
jax: 0.10.0
libtpu: 0.0.40
codegen_flags: <defaults>
</compile_context>

<pallas_src>
import functools
import numpy as np
import jax
import jax.numpy as jnp
from jax.experimental import pallas as pl
from jax.experimental.pallas import tpu as pltpu


# ----------------------------- operator setup (host) -------------------------
def _pool_matrix(n, s):
    p = np.zeros((n // s, n), np.float32)
    for i in range(n // s):
        p[i, i * s:(i + 1) * s] = 1.0 / s
    return p


def _smooth_matrix(n):  # [1, 2, 1] with replicate padding
    m = np.zeros((n, n), np.float32)
    for i in range(n):
        m[i, max(i - 1, 0)] += 1.0
        m[i, i] += 2.0
        m[i, min(i + 1, n - 1)] += 1.0
    return m


def _diff_matrix(n):  # [-1, 0, 1] with replicate padding
    m = np.zeros((n, n), np.float32)
    for i in range(n):
        m[i, max(i - 1, 0)] += -1.0
        m[i, min(i + 1, n - 1)] += 1.0
    return m


def _box_matrix(n):  # 0/1 indicator of the full 3-tap window (replicate padding)
    m = np.zeros((n, n), np.float32)
    for i in range(n):
        m[i, max(i - 1, 0)] = 1.0
        m[i, i] = 1.0
        m[i, min(i + 1, n - 1)] = 1.0
    return m


def _build_operators(H, W, start_scale, num_scales):
    """Per scale: rs, rd (Hs,H); cst_t, cdt_t (W,Ws) with 1/8 folded in;
    frow (Hs,H), fcol_t (W,Ws) 0/1 NaN-footprint indicators. All bf16 (exact)."""
    ops = []
    for k in range(num_scales):
        s = start_scale * 2 ** k
        # TODO(synk): PyTorch AvgPool2d floors non-divisible spatial dims; only
        # the exactly-divisible case is implemented here.
        assert H % s == 0 and W % s == 0, "spatial dims must divide pool size"
        Hs, Ws = H // s, W // s
        ph, pw = _pool_matrix(H, s), _pool_matrix(W, s)
        ph_i = (ph > 0).astype(np.float32)
        pw_i = (pw > 0).astype(np.float32)
        rs = _smooth_matrix(Hs) @ ph                         # (Hs,H) vertical [1,2,1]
        rd = _diff_matrix(Hs) @ ph                           # (Hs,H) vertical [-1,0,1]
        cst_t = 0.125 * (pw.T @ _smooth_matrix(Ws).T)        # (W,Ws) horiz [1,2,1]/8
        cdt_t = 0.125 * (pw.T @ _diff_matrix(Ws).T)          # (W,Ws) horiz [-1,0,1]/8
        frow = (_box_matrix(Hs) @ ph_i > 0).astype(np.float32)        # (Hs,H) 0/1
        fcol_t = (pw_i.T @ _box_matrix(Ws).T > 0).astype(np.float32)  # (W,Ws) 0/1
        ops.extend([rs, rd, cst_t, cdt_t, frow, fcol_t])
    return [jnp.asarray(o, dtype=jnp.bfloat16) for o in ops]


# --------------------------------- kernel ------------------------------------
def _msg_kernel(num_scales, bb, pred_ref, tgt_ref, *refs):
    out_ref = refs[-1]                                # SMEM (1, 2*num_scales)
    op_refs = refs[:-1]                               # 6 operators per scale

    diff = pred_ref[...] - tgt_ref[...]               # (bb, H, W) f32
    nan_mask = jnp.isnan(diff)
    xc = jnp.where(nan_mask, jnp.float32(0.0), diff)  # NaN -> 0 (masked later)
    _, H, W = diff.shape

    # Merge (batch, row) so the column pass is one batch-fused MXU contraction.
    x2 = xc.reshape(bb * H, W).astype(jnp.bfloat16)
    m2 = nan_mask.reshape(bb * H, W).astype(jnp.bfloat16)   # 0/1, exact in bf16

    for sc in range(num_scales):                      # static unroll over scales
        rs = op_refs[6 * sc + 0][...]                 # (Hs, H)  bf16
        rd = op_refs[6 * sc + 1][...]                 # (Hs, H)  bf16
        cst_t = op_refs[6 * sc + 2][...]              # (W, Ws)  bf16 (x 1/8)
        cdt_t = op_refs[6 * sc + 3][...]              # (W, Ws)  bf16 (x 1/8)
        frow = op_refs[6 * sc + 4][...]               # (Hs, H)  bf16 0/1
        fcol = op_refs[6 * sc + 5][...]               # (W, Ws)  bf16 0/1
        Ws = cst_t.shape[1]

        # Column pass, fused over (batch, row): three big matmuls, f32
        # accumulation, then one wide bf16 cast per chain (hoisted out of the
        # per-image row loop below).
        yd3 = jnp.dot(x2, cdt_t, preferred_element_type=jnp.float32
                      ).astype(jnp.bfloat16).reshape(bb, H, Ws)        # (bb,H,Ws)
        ys3 = jnp.dot(x2, cst_t, preferred_element_type=jnp.float32
                      ).astype(jnp.bfloat16).reshape(bb, H, Ws)        # (bb,H,Ws)
        # nf values are small integer counts (<= 3*s <= 24): exact in bf16.
        nf3 = jnp.dot(m2, fcol, preferred_element_type=jnp.float32
                      ).astype(jnp.bfloat16).reshape(bb, H, Ws)        # (bb,H,Ws)

        sum_abs = jnp.float32(0.0)
        count = jnp.float32(0.0)
        for b in range(bb):                           # bounded by the batch block
            gx = jnp.dot(rs, yd3[b], preferred_element_type=jnp.float32)  # (Hs,Ws)
            gy = jnp.dot(rd, ys3[b], preferred_element_type=jnp.float32)  # (Hs,Ws)
            fp = jnp.dot(frow, nf3[b], preferred_element_type=jnp.float32)
            # gx and gy share the same NaN footprint (full 3x3 pooled window,
            # since 0*NaN=NaN in the Sobel conv): one footprint chain suffices.
            valid = (fp < 0.5).astype(jnp.float32)    # fp == 0 exactly when clean
            sum_abs += jnp.sum((jnp.abs(gx) + jnp.abs(gy)) * valid)
            count += 2.0 * jnp.sum(valid)

        out_ref[0, sc] = sum_abs
        out_ref[0, num_scales + sc] = count


# --------------------------------- wrapper -----------------------------------
def multi_scale_gradient_loss(prediction, target, start_scale=1, num_scales=4):
    B, H, W = prediction.shape
    ops = _build_operators(H, W, start_scale, num_scales)

    # Batch block: largest divisor of B whose double-buffered pred+tgt blocks
    # stay within a conservative budget (safe for v7x's 64 MiB physical VMEM).
    per_image = H * W * 4
    budget = 12 << 20
    bb = max(1, min(B, budget // max(1, 4 * per_image)))
    while B % bb:
        bb -= 1
    nb = B // bb

    op_bytes = sum(int(np.prod(o.shape)) * 2 for o in ops)
    vmem_need = 4 * bb * per_image + 2 * op_bytes + (2 << 20)
    vmem_limit = int(max(32 << 20, min(vmem_need, 64 << 20)))

    flops = 0
    for k in range(num_scales):
        s = start_scale * 2 ** k
        Hs, Ws = H // s, W // s
        flops += 3 * 2 * B * H * W * Ws            # column pass
        flops += 3 * 2 * B * Hs * H * Ws           # row pass
    bytes_accessed = 2 * B * H * W * 4 + op_bytes + nb * 2 * num_scales * 4
    cost = pl.CostEstimate(flops=int(flops), transcendentals=0,
                           bytes_accessed=int(bytes_accessed))

    data_spec = pl.BlockSpec((bb, H, W), lambda i: (i, 0, 0))
    op_specs = [pl.BlockSpec(o.shape, lambda i: (0, 0)) for o in ops]  # resident
    out_spec = pl.BlockSpec((1, 2 * num_scales), lambda i: (i, 0),
                            memory_space=pltpu.MemorySpace.SMEM)

    kernel = functools.partial(_msg_kernel, num_scales, bb)
    parts = pl.pallas_call(
        kernel,
        out_shape=jax.ShapeDtypeStruct((nb, 2 * num_scales), jnp.float32),
        grid_spec=pltpu.PrefetchScalarGridSpec(
            num_scalar_prefetch=0,
            grid=(nb,),
            in_specs=[data_spec, data_spec] + op_specs,
            out_specs=out_spec,
        ),
        compiler_params=pltpu.CompilerParams(
            dimension_semantics=("parallel",),
            vmem_limit_bytes=vmem_limit,
        ),
        cost_estimate=cost,
    )(prediction, target, *ops)

    # Finalize in the wrapper: per-scale sum / count, then * B * 2, mean over scales.
    sums = jnp.sum(parts[:, :num_scales], axis=0)
    cnts = jnp.sum(parts[:, num_scales:], axis=0)
    return jnp.mean(sums / cnts) * jnp.float32(2.0 * B)


# ------------------------------ numpy reference ------------------------------
def _numpy_reference(pred, tgt, start_scale=1, num_scales=4):
    diff = pred - tgt
    kx = np.array([[-1, 0, 1], [-2, 0, 2], [-1, 0, 1]], np.float32) / 8.0
    ky = kx.T.copy()
    B, H, W = diff.shape
    total = 0.0
    for k in range(num_scales):
        s = start_scale * 2 ** k
        Hs, Ws = H // s, W // s
        pooled = diff.reshape(B, Hs, s, Ws, s).mean(axis=(2, 4))
        pad = np.pad(pooled, ((0, 0), (1, 1), (1, 1)), mode="edge")
        gx = np.zeros_like(pooled)
        gy = np.zeros_like(pooled)
        for di in range(3):
            for dj in range(3):
                win = pad[:, di:di + Hs, dj:dj + Ws]
                gx += kx[di, dj] * win
                gy += ky[di, dj] * win
        g = np.stack([gx, gy], axis=1)
        nan = np.isnan(g)
        total += np.abs(g[~nan]).sum() / (~nan).sum() * B * 2
    return total / num_scales


# ----------------------------------- main ------------------------------------
if __name__ == "__main__":
    key = jax.random.PRNGKey(0)
    k1, k2 = jax.random.split(key)
    B, H, W = 2, 16, 16
    prediction = jax.random.normal(k1, (B, H, W), dtype=jnp.float32)
    target = jax.random.normal(k2, (B, H, W), dtype=jnp.float32)

    loss = multi_scale_gradient_loss(prediction, target)
    loss = jax.block_until_ready(loss)

    ref = _numpy_reference(np.asarray(prediction), np.asarray(target))
    assert np.isfinite(float(loss)), float(loss)
    assert abs(float(loss) - ref) <= 2e-2 * max(1.0, abs(ref)), (float(loss), ref)
    print("KERNEL_OK")
</pallas_src>

<mosaic_0001>
module attributes {stable_mosaic.version = 11 : i64} {
  func.func @_msg_kernel(%arg0: i32, %arg1: memref<2x16x16xf32, #tpu.memory_space<vmem>>, %arg2: memref<2x16x16xf32, #tpu.memory_space<vmem>>, %arg3: memref<16x16xbf16, #tpu.memory_space<vmem>>, %arg4: memref<16x16xbf16, #tpu.memory_space<vmem>>, %arg5: memref<16x16xbf16, #tpu.memory_space<vmem>>, %arg6: memref<16x16xbf16, #tpu.memory_space<vmem>>, %arg7: memref<16x16xbf16, #tpu.memory_space<vmem>>, %arg8: memref<16x16xbf16, #tpu.memory_space<vmem>>, %arg9: memref<8x16xbf16, #tpu.memory_space<vmem>>, %arg10: memref<8x16xbf16, #tpu.memory_space<vmem>>, %arg11: memref<16x8xbf16, #tpu.memory_space<vmem>>, %arg12: memref<16x8xbf16, #tpu.memory_space<vmem>>, %arg13: memref<8x16xbf16, #tpu.memory_space<vmem>>, %arg14: memref<16x8xbf16, #tpu.memory_space<vmem>>, %arg15: memref<4x16xbf16, #tpu.memory_space<vmem>>, %arg16: memref<4x16xbf16, #tpu.memory_space<vmem>>, %arg17: memref<16x4xbf16, #tpu.memory_space<vmem>>, %arg18: memref<16x4xbf16, #tpu.memory_space<vmem>>, %arg19: memref<4x16xbf16, #tpu.memory_space<vmem>>, %arg20: memref<16x4xbf16, #tpu.memory_space<vmem>>, %arg21: memref<2x16xbf16, #tpu.memory_space<vmem>>, %arg22: memref<2x16xbf16, #tpu.memory_space<vmem>>, %arg23: memref<16x2xbf16, #tpu.memory_space<vmem>>, %arg24: memref<16x2xbf16, #tpu.memory_space<vmem>>, %arg25: memref<2x16xbf16, #tpu.memory_space<vmem>>, %arg26: memref<16x2xbf16, #tpu.memory_space<vmem>>, %arg27: memref<1x8xf32, #tpu.memory_space<smem>>) attributes {dimension_semantics = [#tpu.dimension_semantics<parallel>], iteration_bounds = array<i64: 1>, scalar_prefetch = 0 : i64, scratch_operands = 0 : i64, tpu.core_type = #tpu.core_type<tc>, window_params = [{transform_indices = @transform_0, window_bounds = array<i64: 2, 16, 16>}, {transform_indices = @transform_1, window_bounds = array<i64: 2, 16, 16>}, {pipeline_mode = #tpu.pipeline_mode<synchronous>, transform_indices = @transform_2, window_bounds = array<i64: 16, 16>}, {pipeline_mode = #tpu.pipeline_mode<synchronous>, transform_indices = @transform_3, window_bounds = array<i64: 16, 16>}, {pipeline_mode = #tpu.pipeline_mode<synchronous>, transform_indices = @transform_4, window_bounds = array<i64: 16, 16>}, {pipeline_mode = #tpu.pipeline_mode<synchronous>, transform_indices = @transform_5, window_bounds = array<i64: 16, 16>}, {pipeline_mode = #tpu.pipeline_mode<synchronous>, transform_indices = @transform_6, window_bounds = array<i64: 16, 16>}, {pipeline_mode = #tpu.pipeline_mode<synchronous>, transform_indices = @transform_7, window_bounds = array<i64: 16, 16>}, {pipeline_mode = #tpu.pipeline_mode<synchronous>, transform_indices = @transform_8, window_bounds = array<i64: 8, 16>}, {pipeline_mode = #tpu.pipeline_mode<synchronous>, transform_indices = @transform_9, window_bounds = array<i64: 8, 16>}, {pipeline_mode = #tpu.pipeline_mode<synchronous>, transform_indices = @transform_10, window_bounds = array<i64: 16, 8>}, {pipeline_mode = #tpu.pipeline_mode<synchronous>, transform_indices = @transform_11, window_bounds = array<i64: 16, 8>}, {pipeline_mode = #tpu.pipeline_mode<synchronous>, transform_indices = @transform_12, window_bounds = array<i64: 8, 16>}, {pipeline_mode = #tpu.pipeline_mode<synchronous>, transform_indices = @transform_13, window_bounds = array<i64: 16, 8>}, {pipeline_mode = #tpu.pipeline_mode<synchronous>, transform_indices = @transform_14, window_bounds = array<i64: 4, 16>}, {pipeline_mode = #tpu.pipeline_mode<synchronous>, transform_indices = @transform_15, window_bounds = array<i64: 4, 16>}, {pipeline_mode = #tpu.pipeline_mode<synchronous>, transform_indices = @transform_16, window_bounds = array<i64: 16, 4>}, {pipeline_mode = #tpu.pipeline_mode<synchronous>, transform_indices = @transform_17, window_bounds = array<i64: 16, 4>}, {pipeline_mode = #tpu.pipeline_mode<synchronous>, transform_indices = @transform_18, window_bounds = array<i64: 4, 16>}, {pipeline_mode = #tpu.pipeline_mode<synchronous>, transform_indices = @transform_19, window_bounds = array<i64: 16, 4>}, {pipeline_mode = #tpu.pipeline_mode<synchronous>, transform_indices = @transform_20, window_bounds = array<i64: 2, 16>}, {pipeline_mode = #tpu.pipeline_mode<synchronous>, transform_indices = @transform_21, window_bounds = array<i64: 2, 16>}, {pipeline_mode = #tpu.pipeline_mode<synchronous>, transform_indices = @transform_22, window_bounds = array<i64: 16, 2>}, {pipeline_mode = #tpu.pipeline_mode<synchronous>, transform_indices = @transform_23, window_bounds = array<i64: 16, 2>}, {pipeline_mode = #tpu.pipeline_mode<synchronous>, transform_indices = @transform_24, window_bounds = array<i64: 2, 16>}, {pipeline_mode = #tpu.pipeline_mode<synchronous>, transform_indices = @transform_25, window_bounds = array<i64: 16, 2>}, {transform_indices = @transform_26, window_bounds = array<i64: 1, 8>}]} {
    %c0 = arith.constant 0 : index
    %c0_0 = arith.constant 0 : index
    %c0_1 = arith.constant 0 : index
    %0 = vector.load %arg1[%c0, %c0_0, %c0_1] : memref<2x16x16xf32, #tpu.memory_space<vmem>>, vector<2x16x16xf32>
    %c0_2 = arith.constant 0 : index
    %c0_3 = arith.constant 0 : index
    %c0_4 = arith.constant 0 : index
    %1 = vector.load %arg2[%c0_2, %c0_3, %c0_4] : memref<2x16x16xf32, #tpu.memory_space<vmem>>, vector<2x16x16xf32>
    %2 = arith.subf %0, %1 : vector<2x16x16xf32>
    %3 = arith.cmpf one, %2, %2 : vector<2x16x16xf32>
    %cst = arith.constant 0.000000e+00 : f32
    %4 = vector.broadcast %cst : f32 to vector<2x16x16xf32>
    %5 = arith.select %3, %4, %2 : vector<2x16x16xi1>, vector<2x16x16xf32>
    %6 = vector.shape_cast %5 : vector<2x16x16xf32> to vector<32x16xf32>
    %7 = arith.truncf %6 : vector<32x16xf32> to vector<32x16xbf16>
    %8 = vector.shape_cast %3 : vector<2x16x16xi1> to vector<32x16xi1>
    %9 = arith.extui %8 : vector<32x16xi1> to vector<32x16xi32>
    %10 = arith.sitofp %9 : vector<32x16xi32> to vector<32x16xf32>
    %11 = arith.truncf %10 : vector<32x16xf32> to vector<32x16xbf16>
    %c0_5 = arith.constant 0 : index
    %c0_6 = arith.constant 0 : index
    %12 = vector.load %arg3[%c0_5, %c0_6] : memref<16x16xbf16, #tpu.memory_space<vmem>>, vector<16x16xbf16>
    %c0_7 = arith.constant 0 : index
    %c0_8 = arith.constant 0 : index
    %13 = vector.load %arg4[%c0_7, %c0_8] : memref<16x16xbf16, #tpu.memory_space<vmem>>, vector<16x16xbf16>
    %c0_9 = arith.constant 0 : index
    %c0_10 = arith.constant 0 : index
    %14 = vector.load %arg5[%c0_9, %c0_10] : memref<16x16xbf16, #tpu.memory_space<vmem>>, vector<16x16xbf16>
    %c0_11 = arith.constant 0 : index
    %c0_12 = arith.constant 0 : index
    %15 = vector.load %arg6[%c0_11, %c0_12] : memref<16x16xbf16, #tpu.memory_space<vmem>>, vector<16x16xbf16>
    %c0_13 = arith.constant 0 : index
    %c0_14 = arith.constant 0 : index
    %16 = vector.load %arg7[%c0_13, %c0_14] : memref<16x16xbf16, #tpu.memory_space<vmem>>, vector<16x16xbf16>
    %c0_15 = arith.constant 0 : index
    %c0_16 = arith.constant 0 : index
    %17 = vector.load %arg8[%c0_15, %c0_16] : memref<16x16xbf16, #tpu.memory_space<vmem>>, vector<16x16xbf16>
    %cst_17 = arith.constant dense<0.000000e+00> : vector<32x16xf32>
    %18 = tpu.matmul %7, %15, %cst_17 {dimension_numbers = #tpu.dot_dimension_numbers<[1], [0], [0], [1], [0, 0, 1, 1], [], []>} : vector<32x16xbf16>, vector<16x16xbf16>, vector<32x16xf32> -> vector<32x16xf32>
    %19 = arith.truncf %18 : vector<32x16xf32> to vector<32x16xbf16>
    %20 = vector.shape_cast %19 : vector<32x16xbf16> to vector<2x16x16xbf16>
    %cst_18 = arith.constant dense<0.000000e+00> : vector<32x16xf32>
    %21 = tpu.matmul %7, %14, %cst_18 {dimension_numbers = #tpu.dot_dimension_numbers<[1], [0], [0], [1], [0, 0, 1, 1], [], []>} : vector<32x16xbf16>, vector<16x16xbf16>, vector<32x16xf32> -> vector<32x16xf32>
    %22 = arith.truncf %21 : vector<32x16xf32> to vector<32x16xbf16>
    %23 = vector.shape_cast %22 : vector<32x16xbf16> to vector<2x16x16xbf16>
    %cst_19 = arith.constant dense<0.000000e+00> : vector<32x16xf32>
    %24 = tpu.matmul %11, %17, %cst_19 {dimension_numbers = #tpu.dot_dimension_numbers<[1], [0], [0], [1], [0, 0, 1, 1], [], []>} : vector<32x16xbf16>, vector<16x16xbf16>, vector<32x16xf32> -> vector<32x16xf32>
    %25 = arith.truncf %24 : vector<32x16xf32> to vector<32x16xbf16>
    %26 = vector.shape_cast %25 : vector<32x16xbf16> to vector<2x16x16xbf16>
    %27 = vector.extract_strided_slice %20 {offsets = [0, 0, 0], sizes = [1, 16, 16], strides = [1, 1, 1]} : vector<2x16x16xbf16> to vector<1x16x16xbf16>
    %28 = vector.shape_cast %27 : vector<1x16x16xbf16> to vector<16x16xbf16>
    %cst_20 = arith.constant dense<0.000000e+00> : vector<16x16xf32>
    %29 = tpu.matmul %12, %28, %cst_20 {dimension_numbers = #tpu.dot_dimension_numbers<[1], [0], [0], [1], [0, 0, 1, 1], [], []>} : vector<16x16xbf16>, vector<16x16xbf16>, vector<16x16xf32> -> vector<16x16xf32>
    %30 = vector.extract_strided_slice %23 {offsets = [0, 0, 0], sizes = [1, 16, 16], strides = [1, 1, 1]} : vector<2x16x16xbf16> to vector<1x16x16xbf16>
    %31 = vector.shape_cast %30 : vector<1x16x16xbf16> to vector<16x16xbf16>
    %cst_21 = arith.constant dense<0.000000e+00> : vector<16x16xf32>
    %32 = tpu.matmul %13, %31, %cst_21 {dimension_numbers = #tpu.dot_dimension_numbers<[1], [0], [0], [1], [0, 0, 1, 1], [], []>} : vector<16x16xbf16>, vector<16x16xbf16>, vector<16x16xf32> -> vector<16x16xf32>
    %33 = vector.extract_strided_slice %26 {offsets = [0, 0, 0], sizes = [1, 16, 16], strides = [1, 1, 1]} : vector<2x16x16xbf16> to vector<1x16x16xbf16>
    %34 = vector.shape_cast %33 : vector<1x16x16xbf16> to vector<16x16xbf16>
    %cst_22 = arith.constant dense<0.000000e+00> : vector<16x16xf32>
    %35 = tpu.matmul %16, %34, %cst_22 {dimension_numbers = #tpu.dot_dimension_numbers<[1], [0], [0], [1], [0, 0, 1, 1], [], []>} : vector<16x16xbf16>, vector<16x16xbf16>, vector<16x16xf32> -> vector<16x16xf32>
    %cst_23 = arith.constant 5.000000e-01 : f32
    %36 = vector.broadcast %cst_23 : f32 to vector<16x16xf32>
    %37 = arith.cmpf olt, %35, %36 : vector<16x16xf32>
    %38 = arith.extui %37 : vector<16x16xi1> to vector<16x16xi32>
    %39 = arith.sitofp %38 : vector<16x16xi32> to vector<16x16xf32>
    %40 = math.absf %29 : vector<16x16xf32>
    %41 = math.absf %32 : vector<16x16xf32>
    %42 = arith.addf %40, %41 : vector<16x16xf32>
    %43 = arith.mulf %42, %39 : vector<16x16xf32>
    %44 = vector.shape_cast %43 : vector<16x16xf32> to vector<1x16x16xf32>
    %cst_24 = arith.constant dense<0.000000e+00> : vector<1xf32>
    %45 = vector.multi_reduction <add>, %44, %cst_24 [1, 2] : vector<1x16x16xf32> to vector<1xf32>
    %46 = vector.shape_cast %45 : vector<1xf32> to vector<1x1x1xf32>
    %47 = vector.extract %46[0, 0, 0] : f32 from vector<1x1x1xf32>
    %cst_25 = arith.constant 0.000000e+00 : f32
    %48 = arith.addf %cst_25, %47 : f32
    %49 = vector.shape_cast %39 : vector<16x16xf32> to vector<1x16x16xf32>
    %cst_26 = arith.constant dense<0.000000e+00> : vector<1xf32>
    %50 = vector.multi_reduction <add>, %49, %cst_26 [1, 2] : vector<1x16x16xf32> to vector<1xf32>
    %51 = vector.shape_cast %50 : vector<1xf32> to vector<1x1x1xf32>
    %52 = vector.extract %51[0, 0, 0] : f32 from vector<1x1x1xf32>
    %cst_27 = arith.constant 2.000000e+00 : f32
    %53 = arith.mulf %cst_27, %52 : f32
    %cst_28 = arith.constant 0.000000e+00 : f32
    %54 = arith.addf %cst_28, %53 : f32
    %55 = vector.extract_strided_slice %20 {offsets = [1, 0, 0], sizes = [1, 16, 16], strides = [1, 1, 1]} : vector<2x16x16xbf16> to vector<1x16x16xbf16>
    %56 = vector.shape_cast %55 : vector<1x16x16xbf16> to vector<16x16xbf16>
    %cst_29 = arith.constant dense<0.000000e+00> : vector<16x16xf32>
    %57 = tpu.matmul %12, %56, %cst_29 {dimension_numbers = #tpu.dot_dimension_numbers<[1], [0], [0], [1], [0, 0, 1, 1], [], []>} : vector<16x16xbf16>, vector<16x16xbf16>, vector<16x16xf32> -> vector<16x16xf32>
    %58 = vector.extract_strided_slice %23 {offsets = [1, 0, 0], sizes = [1, 16, 16], strides = [1, 1, 1]} : vector<2x16x16xbf16> to vector<1x16x16xbf16>
    %59 = vector.shape_cast %58 : vector<1x16x16xbf16> to vector<16x16xbf16>
    %cst_30 = arith.constant dense<0.000000e+00> : vector<16x16xf32>
    %60 = tpu.matmul %13, %59, %cst_30 {dimension_numbers = #tpu.dot_dimension_numbers<[1], [0], [0], [1], [0, 0, 1, 1], [], []>} : vector<16x16xbf16>, vector<16x16xbf16>, vector<16x16xf32> -> vector<16x16xf32>
    %61 = vector.extract_strided_slice %26 {offsets = [1, 0, 0], sizes = [1, 16, 16], strides = [1, 1, 1]} : vector<2x16x16xbf16> to vector<1x16x16xbf16>
    %62 = vector.shape_cast %61 : vector<1x16x16xbf16> to vector<16x16xbf16>
    %cst_31 = arith.constant dense<0.000000e+00> : vector<16x16xf32>
    %63 = tpu.matmul %16, %62, %cst_31 {dimension_numbers = #tpu.dot_dimension_numbers<[1], [0], [0], [1], [0, 0, 1, 1], [], []>} : vector<16x16xbf16>, vector<16x16xbf16>, vector<16x16xf32> -> vector<16x16xf32>
    %cst_32 = arith.constant 5.000000e-01 : f32
    %64 = vector.broadcast %cst_32 : f32 to vector<16x16xf32>
    %65 = arith.cmpf olt, %63, %64 : vector<16x16xf32>
    %66 = arith.extui %65 : vector<16x16xi1> to vector<16x16xi32>
    %67 = arith.sitofp %66 : vector<16x16xi32> to vector<16x16xf32>
    %68 = math.absf %57 : vector<16x16xf32>
    %69 = math.absf %60 : vector<16x16xf32>
    %70 = arith.addf %68, %69 : vector<16x16xf32>
    %71 = arith.mulf %70, %67 : vector<16x16xf32>
    %72 = vector.shape_cast %71 : vector<16x16xf32> to vector<1x16x16xf32>
    %cst_33 = arith.constant dense<0.000000e+00> : vector<1xf32>
    %73 = vector.multi_reduction <add>, %72, %cst_33 [1, 2] : vector<1x16x16xf32> to vector<1xf32>
    %74 = vector.shape_cast %73 : vector<1xf32> to vector<1x1x1xf32>
    %75 = vector.extract %74[0, 0, 0] : f32 from vector<1x1x1xf32>
    %76 = arith.addf %48, %75 : f32
    %77 = vector.shape_cast %67 : vector<16x16xf32> to vector<1x16x16xf32>
    %cst_34 = arith.constant dense<0.000000e+00> : vector<1xf32>
    %78 = vector.multi_reduction <add>, %77, %cst_34 [1, 2] : vector<1x16x16xf32> to vector<1xf32>
    %79 = vector.shape_cast %78 : vector<1xf32> to vector<1x1x1xf32>
    %80 = vector.extract %79[0, 0, 0] : f32 from vector<1x1x1xf32>
    %cst_35 = arith.constant 2.000000e+00 : f32
    %81 = arith.mulf %cst_35, %80 : f32
    %82 = arith.addf %54, %81 : f32
    %c0_36 = arith.constant 0 : index
    %c0_37 = arith.constant 0 : index
    %83 = memref.load %arg27[%c0_36, %c0_37] : memref<1x8xf32, #tpu.memory_space<smem>>
    memref.store %76, %arg27[%c0_36, %c0_37] : memref<1x8xf32, #tpu.memory_space<smem>>
    %c0_38 = arith.constant 0 : index
    %c4 = arith.constant 4 : index
    %84 = memref.load %arg27[%c0_38, %c4] : memref<1x8xf32, #tpu.memory_space<smem>>
    memref.store %82, %arg27[%c0_38, %c4] : memref<1x8xf32, #tpu.memory_space<smem>>
    %c0_39 = arith.constant 0 : index
    %c0_40 = arith.constant 0 : index
    %85 = vector.load %arg9[%c0_39, %c0_40] : memref<8x16xbf16, #tpu.memory_space<vmem>>, vector<8x16xbf16>
    %c0_41 = arith.constant 0 : index
    %c0_42 = arith.constant 0 : index
    %86 = vector.load %arg10[%c0_41, %c0_42] : memref<8x16xbf16, #tpu.memory_space<vmem>>, vector<8x16xbf16>
    %c0_43 = arith.constant 0 : index
    %c0_44 = arith.constant 0 : index
    %87 = vector.load %arg11[%c0_43, %c0_44] : memref<16x8xbf16, #tpu.memory_space<vmem>>, vector<16x8xbf16>
    %c0_45 = arith.constant 0 : index
    %c0_46 = arith.constant 0 : index
    %88 = vector.load %arg12[%c0_45, %c0_46] : memref<16x8xbf16, #tpu.memory_space<vmem>>, vector<16x8xbf16>
    %c0_47 = arith.constant 0 : index
    %c0_48 = arith.constant 0 : index
    %89 = vector.load %arg13[%c0_47, %c0_48] : memref<8x16xbf16, #tpu.memory_space<vmem>>, vector<8x16xbf16>
    %c0_49 = arith.constant 0 : index
    %c0_50 = arith.constant 0 : index
    %90 = vector.load %arg14[%c0_49, %c0_50] : memref<16x8xbf16, #tpu.memory_space<vmem>>, vector<16x8xbf16>
    %cst_51 = arith.constant dense<0.000000e+00> : vector<32x8xf32>
    %91 = tpu.matmul %7, %88, %cst_51 {dimension_numbers = #tpu.dot_dimension_numbers<[1], [0], [0], [1], [0, 0, 1, 1], [], []>} : vector<32x16xbf16>, vector<16x8xbf16>, vector<32x8xf32> -> vector<32x8xf32>
    %92 = arith.truncf %91 : vector<32x8xf32> to vector<32x8xbf16>
    %93 = vector.shape_cast %92 : vector<32x8xbf16> to vector<2x16x8xbf16>
    %cst_52 = arith.constant dense<0.000000e+00> : vector<32x8xf32>
    %94 = tpu.matmul %7, %87, %cst_52 {dimension_numbers = #tpu.dot_dimension_numbers<[1], [0], [0], [1], [0, 0, 1, 1], [], []>} : vector<32x16xbf16>, vector<16x8xbf16>, vector<32x8xf32> -> vector<32x8xf32>
    %95 = arith.truncf %94 : vector<32x8xf32> to vector<32x8xbf16>
    %96 = vector.shape_cast %95 : vector<32x8xbf16> to vector<2x16x8xbf16>
    %cst_53 = arith.constant dense<0.000000e+00> : vector<32x8xf32>
    %97 = tpu.matmul %11, %90, %cst_53 {dimension_numbers = #tpu.dot_dimension_numbers<[1], [0], [0], [1], [0, 0, 1, 1], [], []>} : vector<32x16xbf16>, vector<16x8xbf16>, vector<32x8xf32> -> vector<32x8xf32>
    %98 = arith.truncf %97 : vector<32x8xf32> to vector<32x8xbf16>
    %99 = vector.shape_cast %98 : vector<32x8xbf16> to vector<2x16x8xbf16>
    %100 = vector.extract_strided_slice %93 {offsets = [0, 0, 0], sizes = [1, 16, 8], strides = [1, 1, 1]} : vector<2x16x8xbf16> to vector<1x16x8xbf16>
    %101 = vector.shape_cast %100 : vector<1x16x8xbf16> to vector<16x8xbf16>
    %cst_54 = arith.constant dense<0.000000e+00> : vector<8x8xf32>
    %102 = tpu.matmul %85, %101, %cst_54 {dimension_numbers = #tpu.dot_dimension_numbers<[1], [0], [0], [1], [0, 0, 1, 1], [], []>} : vector<8x16xbf16>, vector<16x8xbf16>, vector<8x8xf32> -> vector<8x8xf32>
    %103 = vector.extract_strided_slice %96 {offsets = [0, 0, 0], sizes = [1, 16, 8], strides = [1, 1, 1]} : vector<2x16x8xbf16> to vector<1x16x8xbf16>
    %104 = vector.shape_cast %103 : vector<1x16x8xbf16> to vector<16x8xbf16>
    %cst_55 = arith.constant dense<0.000000e+00> : vector<8x8xf32>
    %105 = tpu.matmul %86, %104, %cst_55 {dimension_numbers = #tpu.dot_dimension_numbers<[1], [0], [0], [1], [0, 0, 1, 1], [], []>} : vector<8x16xbf16>, vector<16x8xbf16>, vector<8x8xf32> -> vector<8x8xf32>
    %106 = vector.extract_strided_slice %99 {offsets = [0, 0, 0], sizes = [1, 16, 8], strides = [1, 1, 1]} : vector<2x16x8xbf16> to vector<1x16x8xbf16>
    %107 = vector.shape_cast %106 : vector<1x16x8xbf16> to vector<16x8xbf16>
    %cst_56 = arith.constant dense<0.000000e+00> : vector<8x8xf32>
    %108 = tpu.matmul %89, %107, %cst_56 {dimension_numbers = #tpu.dot_dimension_numbers<[1], [0], [0], [1], [0, 0, 1, 1], [], []>} : vector<8x16xbf16>, vector<16x8xbf16>, vector<8x8xf32> -> vector<8x8xf32>
    %cst_57 = arith.constant 5.000000e-01 : f32
    %109 = vector.broadcast %cst_57 : f32 to vector<8x8xf32>
    %110 = arith.cmpf olt, %108, %109 : vector<8x8xf32>
    %111 = arith.extui %110 : vector<8x8xi1> to vector<8x8xi32>
    %112 = arith.sitofp %111 : vector<8x8xi32> to vector<8x8xf32>
    %113 = math.absf %102 : vector<8x8xf32>
    %114 = math.absf %105 : vector<8x8xf32>
    %115 = arith.addf %113, %114 : vector<8x8xf32>
    %116 = arith.mulf %115, %112 : vector<8x8xf32>
    %117 = vector.shape_cast %116 : vector<8x8xf32> to vector<1x8x8xf32>
    %cst_58 = arith.constant dense<0.000000e+00> : vector<1xf32>
    %118 = vector.multi_reduction <add>, %117, %cst_58 [1, 2] : vector<1x8x8xf32> to vector<1xf32>
    %119 = vector.shape_cast %118 : vector<1xf32> to vector<1x1x1xf32>
    %120 = vector.extract %119[0, 0, 0] : f32 from vector<1x1x1xf32>
    %cst_59 = arith.constant 0.000000e+00 : f32
    %121 = arith.addf %cst_59, %120 : f32
    %122 = vector.shape_cast %112 : vector<8x8xf32> to vector<1x8x8xf32>
    %cst_60 = arith.constant dense<0.000000e+00> : vector<1xf32>
    %123 = vector.multi_reduction <add>, %122, %cst_60 [1, 2] : vector<1x8x8xf32> to vector<1xf32>
    %124 = vector.shape_cast %123 : vector<1xf32> to vector<1x1x1xf32>
    %125 = vector.extract %124[0, 0, 0] : f32 from vector<1x1x1xf32>
    %cst_61 = arith.constant 2.000000e+00 : f32
    %126 = arith.mulf %cst_61, %125 : f32
    %cst_62 = arith.constant 0.000000e+00 : f32
    %127 = arith.addf %cst_62, %126 : f32
    %128 = vector.extract_strided_slice %93 {offsets = [1, 0, 0], sizes = [1, 16, 8], strides = [1, 1, 1]} : vector<2x16x8xbf16> to vector<1x16x8xbf16>
    %129 = vector.shape_cast %128 : vector<1x16x8xbf16> to vector<16x8xbf16>
    %cst_63 = arith.constant dense<0.000000e+00> : vector<8x8xf32>
    %130 = tpu.matmul %85, %129, %cst_63 {dimension_numbers = #tpu.dot_dimension_numbers<[1], [0], [0], [1], [0, 0, 1, 1], [], []>} : vector<8x16xbf16>, vector<16x8xbf16>, vector<8x8xf32> -> vector<8x8xf32>
    %131 = vector.extract_strided_slice %96 {offsets = [1, 0, 0], sizes = [1, 16, 8], strides = [1, 1, 1]} : vector<2x16x8xbf16> to vector<1x16x8xbf16>
    %132 = vector.shape_cast %131 : vector<1x16x8xbf16> to vector<16x8xbf16>
    %cst_64 = arith.constant dense<0.000000e+00> : vector<8x8xf32>
    %133 = tpu.matmul %86, %132, %cst_64 {dimension_numbers = #tpu.dot_dimension_numbers<[1], [0], [0], [1], [0, 0, 1, 1], [], []>} : vector<8x16xbf16>, vector<16x8xbf16>, vector<8x8xf32> -> vector<8x8xf32>
    %134 = vector.extract_strided_slice %99 {offsets = [1, 0, 0], sizes = [1, 16, 8], strides = [1, 1, 1]} : vector<2x16x8xbf16> to vector<1x16x8xbf16>
    %135 = vector.shape_cast %134 : vector<1x16x8xbf16> to vector<16x8xbf16>
    %cst_65 = arith.constant dense<0.000000e+00> : vector<8x8xf32>
    %136 = tpu.matmul %89, %135, %cst_65 {dimension_numbers = #tpu.dot_dimension_numbers<[1], [0], [0], [1], [0, 0, 1, 1], [], []>} : vector<8x16xbf16>, vector<16x8xbf16>, vector<8x8xf32> -> vector<8x8xf32>
    %cst_66 = arith.constant 5.000000e-01 : f32
    %137 = vector.broadcast %cst_66 : f32 to vector<8x8xf32>
    %138 = arith.cmpf olt, %136, %137 : vector<8x8xf32>
    %139 = arith.extui %138 : vector<8x8xi1> to vector<8x8xi32>
    %140 = arith.sitofp %139 : vector<8x8xi32> to vector<8x8xf32>
    %141 = math.absf %130 : vector<8x8xf32>
    %142 = math.absf %133 : vector<8x8xf32>
    %143 = arith.addf %141, %142 : vector<8x8xf32>
    %144 = arith.mulf %143, %140 : vector<8x8xf32>
    %145 = vector.shape_cast %144 : vector<8x8xf32> to vector<1x8x8xf32>
    %cst_67 = arith.constant dense<0.000000e+00> : vector<1xf32>
    %146 = vector.multi_reduction <add>, %145, %cst_67 [1, 2] : vector<1x8x8xf32> to vector<1xf32>
    %147 = vector.shape_cast %146 : vector<1xf32> to vector<1x1x1xf32>
    %148 = vector.extract %147[0, 0, 0] : f32 from vector<1x1x1xf32>
    %149 = arith.addf %121, %148 : f32
    %150 = vector.shape_cast %140 : vector<8x8xf32> to vector<1x8x8xf32>
    %cst_68 = arith.constant dense<0.000000e+00> : vector<1xf32>
    %151 = vector.multi_reduction <add>, %150, %cst_68 [1, 2] : vector<1x8x8xf32> to vector<1xf32>
    %152 = vector.shape_cast %151 : vector<1xf32> to vector<1x1x1xf32>
    %153 = vector.extract %152[0, 0, 0] : f32 from vector<1x1x1xf32>
    %cst_69 = arith.constant 2.000000e+00 : f32
    %154 = arith.mulf %cst_69, %153 : f32
    %155 = arith.addf %127, %154 : f32
    %c0_70 = arith.constant 0 : index
    %c1 = arith.constant 1 : index
    %156 = memref.load %arg27[%c0_70, %c1] : memref<1x8xf32, #tpu.memory_space<smem>>
    memref.store %149, %arg27[%c0_70, %c1] : memref<1x8xf32, #tpu.memory_space<smem>>
    %c0_71 = arith.constant 0 : index
    %c5 = arith.constant 5 : index
    %157 = memref.load %arg27[%c0_71, %c5] : memref<1x8xf32, #tpu.memory_space<smem>>
    memref.store %155, %arg27[%c0_71, %c5] : memref<1x8xf32, #tpu.memory_space<smem>>
    %c0_72 = arith.constant 0 : index
    %c0_73 = arith.constant 0 : index
    %158 = vector.load %arg15[%c0_72, %c0_73] : memref<4x16xbf16, #tpu.memory_space<vmem>>, vector<4x16xbf16>
    %c0_74 = arith.constant 0 : index
    %c0_75 = arith.constant 0 : index
    %159 = vector.load %arg16[%c0_74, %c0_75] : memref<4x16xbf16, #tpu.memory_space<vmem>>, vector<4x16xbf16>
    %c0_76 = arith.constant 0 : index
    %c0_77 = arith.constant 0 : index
    %160 = vector.load %arg17[%c0_76, %c0_77] : memref<16x4xbf16, #tpu.memory_space<vmem>>, vector<16x4xbf16>
    %c0_78 = arith.constant 0 : index
    %c0_79 = arith.constant 0 : index
    %161 = vector.load %arg18[%c0_78, %c0_79] : memref<16x4xbf16, #tpu.memory_space<vmem>>, vector<16x4xbf16>
    %c0_80 = arith.constant 0 : index
    %c0_81 = arith.constant 0 : index
    %162 = vector.load %arg19[%c0_80, %c0_81] : memref<4x16xbf16, #tpu.memory_space<vmem>>, vector<4x16xbf16>
    %c0_82 = arith.constant 0 : index
    %c0_83 = arith.constant 0 : index
    %163 = vector.load %arg20[%c0_82, %c0_83] : memref<16x4xbf16, #tpu.memory_space<vmem>>, vector<16x4xbf16>
    %cst_84 = arith.constant dense<0.000000e+00> : vector<32x4xf32>
    %164 = tpu.matmul %7, %161, %cst_84 {dimension_numbers = #tpu.dot_dimension_numbers<[1], [0], [0], [1], [0, 0, 1, 1], [], []>} : vector<32x16xbf16>, vector<16x4xbf16>, vector<32x4xf32> -> vector<32x4xf32>
    %165 = arith.truncf %164 : vector<32x4xf32> to vector<32x4xbf16>
    %166 = vector.shape_cast %165 : vector<32x4xbf16> to vector<2x16x4xbf16>
    %cst_85 = arith.constant dense<0.000000e+00> : vector<32x4xf32>
    %167 = tpu.matmul %7, %160, %cst_85 {dimension_numbers = #tpu.dot_dimension_numbers<[1], [0], [0], [1], [0, 0, 1, 1], [], []>} : vector<32x16xbf16>, vector<16x4xbf16>, vector<32x4xf32> -> vector<32x4xf32>
    %168 = arith.truncf %167 : vector<32x4xf32> to vector<32x4xbf16>
    %169 = vector.shape_cast %168 : vector<32x4xbf16> to vector<2x16x4xbf16>
    %cst_86 = arith.constant dense<0.000000e+00> : vector<32x4xf32>
    %170 = tpu.matmul %11, %163, %cst_86 {dimension_numbers = #tpu.dot_dimension_numbers<[1], [0], [0], [1], [0, 0, 1, 1], [], []>} : vector<32x16xbf16>, vector<16x4xbf16>, vector<32x4xf32> -> vector<32x4xf32>
    %171 = arith.truncf %170 : vector<32x4xf32> to vector<32x4xbf16>
    %172 = vector.shape_cast %171 : vector<32x4xbf16> to vector<2x16x4xbf16>
    %173 = vector.extract_strided_slice %166 {offsets = [0, 0, 0], sizes = [1, 16, 4], strides = [1, 1, 1]} : vector<2x16x4xbf16> to vector<1x16x4xbf16>
    %174 = vector.shape_cast %173 : vector<1x16x4xbf16> to vector<16x4xbf16>
    %cst_87 = arith.constant dense<0.000000e+00> : vector<4x4xf32>
    %175 = tpu.matmul %158, %174, %cst_87 {dimension_numbers = #tpu.dot_dimension_numbers<[1], [0], [0], [1], [0, 0, 1, 1], [], []>} : vector<4x16xbf16>, vector<16x4xbf16>, vector<4x4xf32> -> vector<4x4xf32>
    %176 = vector.extract_strided_slice %169 {offsets = [0, 0, 0], sizes = [1, 16, 4], strides = [1, 1, 1]} : vector<2x16x4xbf16> to vector<1x16x4xbf16>
    %177 = vector.shape_cast %176 : vector<1x16x4xbf16> to vector<16x4xbf16>
    %cst_88 = arith.constant dense<0.000000e+00> : vector<4x4xf32>
    %178 = tpu.matmul %159, %177, %cst_88 {dimension_numbers = #tpu.dot_dimension_numbers<[1], [0], [0], [1], [0, 0, 1, 1], [], []>} : vector<4x16xbf16>, vector<16x4xbf16>, vector<4x4xf32> -> vector<4x4xf32>
    %179 = vector.extract_strided_slice %172 {offsets = [0, 0, 0], sizes = [1, 16, 4], strides = [1, 1, 1]} : vector<2x16x4xbf16> to vector<1x16x4xbf16>
    %180 = vector.shape_cast %179 : vector<1x16x4xbf16> to vector<16x4xbf16>
    %cst_89 = arith.constant dense<0.000000e+00> : vector<4x4xf32>
    %181 = tpu.matmul %162, %180, %cst_89 {dimension_numbers = #tpu.dot_dimension_numbers<[1], [0], [0], [1], [0, 0, 1, 1], [], []>} : vector<4x16xbf16>, vector<16x4xbf16>, vector<4x4xf32> -> vector<4x4xf32>
    %cst_90 = arith.constant 5.000000e-01 : f32
    %182 = vector.broadcast %cst_90 : f32 to vector<4x4xf32>
    %183 = arith.cmpf olt, %181, %182 : vector<4x4xf32>
    %184 = arith.extui %183 : vector<4x4xi1> to vector<4x4xi32>
    %185 = arith.sitofp %184 : vector<4x4xi32> to vector<4x4xf32>
    %186 = math.absf %175 : vector<4x4xf32>
    %187 = math.absf %178 : vector<4x4xf32>
    %188 = arith.addf %186, %187 : vector<4x4xf32>
    %189 = arith.mulf %188, %185 : vector<4x4xf32>
    %190 = vector.shape_cast %189 : vector<4x4xf32> to vector<1x4x4xf32>
    %cst_91 = arith.constant dense<0.000000e+00> : vector<1xf32>
    %191 = vector.multi_reduction <add>, %190, %cst_91 [1, 2] : vector<1x4x4xf32> to vector<1xf32>
    %192 = vector.shape_cast %191 : vector<1xf32> to vector<1x1x1xf32>
    %193 = vector.extract %192[0, 0, 0] : f32 from vector<1x1x1xf32>
    %cst_92 = arith.constant 0.000000e+00 : f32
    %194 = arith.addf %cst_92, %193 : f32
    %195 = vector.shape_cast %185 : vector<4x4xf32> to vector<1x4x4xf32>
    %cst_93 = arith.constant dense<0.000000e+00> : vector<1xf32>
    %196 = vector.multi_reduction <add>, %195, %cst_93 [1, 2] : vector<1x4x4xf32> to vector<1xf32>
    %197 = vector.shape_cast %196 : vector<1xf32> to vector<1x1x1xf32>
    %198 = vector.extract %197[0, 0, 0] : f32 from vector<1x1x1xf32>
    %cst_94 = arith.constant 2.000000e+00 : f32
    %199 = arith.mulf %cst_94, %198 : f32
    %cst_95 = arith.constant 0.000000e+00 : f32
    %200 = arith.addf %cst_95, %199 : f32
    %201 = vector.extract_strided_slice %166 {offsets = [1, 0, 0], sizes = [1, 16, 4], strides = [1, 1, 1]} : vector<2x16x4xbf16> to vector<1x16x4xbf16>
    %202 = vector.shape_cast %201 : vector<1x16x4xbf16> to vector<16x4xbf16>
    %cst_96 = arith.constant dense<0.000000e+00> : vector<4x4xf32>
    %203 = tpu.matmul %158, %202, %cst_96 {dimension_numbers = #tpu.dot_dimension_numbers<[1], [0], [0], [1], [0, 0, 1, 1], [], []>} : vector<4x16xbf16>, vector<16x4xbf16>, vector<4x4xf32> -> vector<4x4xf32>
    %204 = vector.extract_strided_slice %169 {offsets = [1, 0, 0], sizes = [1, 16, 4], strides = [1, 1, 1]} : vector<2x16x4xbf16> to vector<1x16x4xbf16>
    %205 = vector.shape_cast %204 : vector<1x16x4xbf16> to vector<16x4xbf16>
    %cst_97 = arith.constant dense<0.000000e+00> : vector<4x4xf32>
    %206 = tpu.matmul %159, %205, %cst_97 {dimension_numbers = #tpu.dot_dimension_numbers<[1], [0], [0], [1], [0, 0, 1, 1], [], []>} : vector<4x16xbf16>, vector<16x4xbf16>, vector<4x4xf32> -> vector<4x4xf32>
    %207 = vector.extract_strided_slice %172 {offsets = [1, 0, 0], sizes = [1, 16, 4], strides = [1, 1, 1]} : vector<2x16x4xbf16> to vector<1x16x4xbf16>
    %208 = vector.shape_cast %207 : vector<1x16x4xbf16> to vector<16x4xbf16>
    %cst_98 = arith.constant dense<0.000000e+00> : vector<4x4xf32>
    %209 = tpu.matmul %162, %208, %cst_98 {dimension_numbers = #tpu.dot_dimension_numbers<[1], [0], [0], [1], [0, 0, 1, 1], [], []>} : vector<4x16xbf16>, vector<16x4xbf16>, vector<4x4xf32> -> vector<4x4xf32>
    %cst_99 = arith.constant 5.000000e-01 : f32
    %210 = vector.broadcast %cst_99 : f32 to vector<4x4xf32>
    %211 = arith.cmpf olt, %209, %210 : vector<4x4xf32>
    %212 = arith.extui %211 : vector<4x4xi1> to vector<4x4xi32>
    %213 = arith.sitofp %212 : vector<4x4xi32> to vector<4x4xf32>
    %214 = math.absf %203 : vector<4x4xf32>
    %215 = math.absf %206 : vector<4x4xf32>
    %216 = arith.addf %214, %215 : vector<4x4xf32>
    %217 = arith.mulf %216, %213 : vector<4x4xf32>
    %218 = vector.shape_cast %217 : vector<4x4xf32> to vector<1x4x4xf32>
    %cst_100 = arith.constant dense<0.000000e+00> : vector<1xf32>
    %219 = vector.multi_reduction <add>, %218, %cst_100 [1, 2] : vector<1x4x4xf32> to vector<1xf32>
    %220 = vector.shape_cast %219 : vector<1xf32> to vector<1x1x1xf32>
    %221 = vector.extract %220[0, 0, 0] : f32 from vector<1x1x1xf32>
    %222 = arith.addf %194, %221 : f32
    %223 = vector.shape_cast %213 : vector<4x4xf32> to vector<1x4x4xf32>
    %cst_101 = arith.constant dense<0.000000e+00> : vector<1xf32>
    %224 = vector.multi_reduction <add>, %223, %cst_101 [1, 2] : vector<1x4x4xf32> to vector<1xf32>
    %225 = vector.shape_cast %224 : vector<1xf32> to vector<1x1x1xf32>
    %226 = vector.extract %225[0, 0, 0] : f32 from vector<1x1x1xf32>
    %cst_102 = arith.constant 2.000000e+00 : f32
    %227 = arith.mulf %cst_102, %226 : f32
    %228 = arith.addf %200, %227 : f32
    %c0_103 = arith.constant 0 : index
    %c2 = arith.constant 2 : index
    %229 = memref.load %arg27[%c0_103, %c2] : memref<1x8xf32, #tpu.memory_space<smem>>
    memref.store %222, %arg27[%c0_103, %c2] : memref<1x8xf32, #tpu.memory_space<smem>>
    %c0_104 = arith.constant 0 : index
    %c6 = arith.constant 6 : index
    %230 = memref.load %arg27[%c0_104, %c6] : memref<1x8xf32, #tpu.memory_space<smem>>
    memref.store %228, %arg27[%c0_104, %c6] : memref<1x8xf32, #tpu.memory_space<smem>>
    %c0_105 = arith.constant 0 : index
    %c0_106 = arith.constant 0 : index
    %231 = vector.load %arg21[%c0_105, %c0_106] : memref<2x16xbf16, #tpu.memory_space<vmem>>, vector<2x16xbf16>
    %c0_107 = arith.constant 0 : index
    %c0_108 = arith.constant 0 : index
    %232 = vector.load %arg22[%c0_107, %c0_108] : memref<2x16xbf16, #tpu.memory_space<vmem>>, vector<2x16xbf16>
    %c0_109 = arith.constant 0 : index
    %c0_110 = arith.constant 0 : index
    %233 = vector.load %arg23[%c0_109, %c0_110] : memref<16x2xbf16, #tpu.memory_space<vmem>>, vector<16x2xbf16>
    %c0_111 = arith.constant 0 : index
    %c0_112 = arith.constant 0 : index
    %234 = vector.load %arg24[%c0_111, %c0_112] : memref<16x2xbf16, #tpu.memory_space<vmem>>, vector<16x2xbf16>
    %c0_113 = arith.constant 0 : index
    %c0_114 = arith.constant 0 : index
    %235 = vector.load %arg25[%c0_113, %c0_114] : memref<2x16xbf16, #tpu.memory_space<vmem>>, vector<2x16xbf16>
    %c0_115 = arith.constant 0 : index
    %c0_116 = arith.constant 0 : index
    %236 = vector.load %arg26[%c0_115, %c0_116] : memref<16x2xbf16, #tpu.memory_space<vmem>>, vector<16x2xbf16>
    %cst_117 = arith.constant dense<0.000000e+00> : vector<32x2xf32>
    %237 = tpu.matmul %7, %234, %cst_117 {dimension_numbers = #tpu.dot_dimension_numbers<[1], [0], [0], [1], [0, 0, 1, 1], [], []>} : vector<32x16xbf16>, vector<16x2xbf16>, vector<32x2xf32> -> vector<32x2xf32>
    %238 = arith.truncf %237 : vector<32x2xf32> to vector<32x2xbf16>
    %239 = vector.shape_cast %238 : vector<32x2xbf16> to vector<2x16x2xbf16>
    %cst_118 = arith.constant dense<0.000000e+00> : vector<32x2xf32>
    %240 = tpu.matmul %7, %233, %cst_118 {dimension_numbers = #tpu.dot_dimension_numbers<[1], [0], [0], [1], [0, 0, 1, 1], [], []>} : vector<32x16xbf16>, vector<16x2xbf16>, vector<32x2xf32> -> vector<32x2xf32>
    %241 = arith.truncf %240 : vector<32x2xf32> to vector<32x2xbf16>
    %242 = vector.shape_cast %241 : vector<32x2xbf16> to vector<2x16x2xbf16>
    %cst_119 = arith.constant dense<0.000000e+00> : vector<32x2xf32>
    %243 = tpu.matmul %11, %236, %cst_119 {dimension_numbers = #tpu.dot_dimension_numbers<[1], [0], [0], [1], [0, 0, 1, 1], [], []>} : vector<32x16xbf16>, vector<16x2xbf16>, vector<32x2xf32> -> vector<32x2xf32>
    %244 = arith.truncf %243 : vector<32x2xf32> to vector<32x2xbf16>
    %245 = vector.shape_cast %244 : vector<32x2xbf16> to vector<2x16x2xbf16>
    %246 = vector.extract_strided_slice %239 {offsets = [0, 0, 0], sizes = [1, 16, 2], strides = [1, 1, 1]} : vector<2x16x2xbf16> to vector<1x16x2xbf16>
    %247 = vector.shape_cast %246 : vector<1x16x2xbf16> to vector<16x2xbf16>
    %cst_120 = arith.constant dense<0.000000e+00> : vector<2x2xf32>
    %248 = tpu.matmul %231, %247, %cst_120 {dimension_numbers = #tpu.dot_dimension_numbers<[1], [0], [0], [1], [0, 0, 1, 1], [], []>} : vector<2x16xbf16>, vector<16x2xbf16>, vector<2x2xf32> -> vector<2x2xf32>
    %249 = vector.extract_strided_slice %242 {offsets = [0, 0, 0], sizes = [1, 16, 2], strides = [1, 1, 1]} : vector<2x16x2xbf16> to vector<1x16x2xbf16>
    %250 = vector.shape_cast %249 : vector<1x16x2xbf16> to vector<16x2xbf16>
    %cst_121 = arith.constant dense<0.000000e+00> : vector<2x2xf32>
    %251 = tpu.matmul %232, %250, %cst_121 {dimension_numbers = #tpu.dot_dimension_numbers<[1], [0], [0], [1], [0, 0, 1, 1], [], []>} : vector<2x16xbf16>, vector<16x2xbf16>, vector<2x2xf32> -> vector<2x2xf32>
    %252 = vector.extract_strided_slice %245 {offsets = [0, 0, 0], sizes = [1, 16, 2], strides = [1, 1, 1]} : vector<2x16x2xbf16> to vector<1x16x2xbf16>
    %253 = vector.shape_cast %252 : vector<1x16x2xbf16> to vector<16x2xbf16>
    %cst_122 = arith.constant dense<0.000000e+00> : vector<2x2xf32>
    %254 = tpu.matmul %235, %253, %cst_122 {dimension_numbers = #tpu.dot_dimension_numbers<[1], [0], [0], [1], [0, 0, 1, 1], [], []>} : vector<2x16xbf16>, vector<16x2xbf16>, vector<2x2xf32> -> vector<2x2xf32>
    %cst_123 = arith.constant 5.000000e-01 : f32
    %255 = vector.broadcast %cst_123 : f32 to vector<2x2xf32>
    %256 = arith.cmpf olt, %254, %255 : vector<2x2xf32>
    %257 = arith.extui %256 : vector<2x2xi1> to vector<2x2xi32>
    %258 = arith.sitofp %257 : vector<2x2xi32> to vector<2x2xf32>
    %259 = math.absf %248 : vector<2x2xf32>
    %260 = math.absf %251 : vector<2x2xf32>
    %261 = arith.addf %259, %260 : vector<2x2xf32>
    %262 = arith.mulf %261, %258 : vector<2x2xf32>
    %263 = vector.shape_cast %262 : vector<2x2xf32> to vector<1x2x2xf32>
    %cst_124 = arith.constant dense<0.000000e+00> : vector<1xf32>
    %264 = vector.multi_reduction <add>, %263, %cst_124 [1, 2] : vector<1x2x2xf32> to vector<1xf32>
    %265 = vector.shape_cast %264 : vector<1xf32> to vector<1x1x1xf32>
    %266 = vector.extract %265[0, 0, 0] : f32 from vector<1x1x1xf32>
    %cst_125 = arith.constant 0.000000e+00 : f32
    %267 = arith.addf %cst_125, %266 : f32
    %268 = vector.shape_cast %258 : vector<2x2xf32> to vector<1x2x2xf32>
    %cst_126 = arith.constant dense<0.000000e+00> : vector<1xf32>
    %269 = vector.multi_reduction <add>, %268, %cst_126 [1, 2] : vector<1x2x2xf32> to vector<1xf32>
    %270 = vector.shape_cast %269 : vector<1xf32> to vector<1x1x1xf32>
    %271 = vector.extract %270[0, 0, 0] : f32 from vector<1x1x1xf32>
    %cst_127 = arith.constant 2.000000e+00 : f32
    %272 = arith.mulf %cst_127, %271 : f32
    %cst_128 = arith.constant 0.000000e+00 : f32
    %273 = arith.addf %cst_128, %272 : f32
    %274 = vector.extract_strided_slice %239 {offsets = [1, 0, 0], sizes = [1, 16, 2], strides = [1, 1, 1]} : vector<2x16x2xbf16> to vector<1x16x2xbf16>
    %275 = vector.shape_cast %274 : vector<1x16x2xbf16> to vector<16x2xbf16>
    %cst_129 = arith.constant dense<0.000000e+00> : vector<2x2xf32>
    %276 = tpu.matmul %231, %275, %cst_129 {dimension_numbers = #tpu.dot_dimension_numbers<[1], [0], [0], [1], [0, 0, 1, 1], [], []>} : vector<2x16xbf16>, vector<16x2xbf16>, vector<2x2xf32> -> vector<2x2xf32>
    %277 = vector.extract_strided_slice %242 {offsets = [1, 0, 0], sizes = [1, 16, 2], strides = [1, 1, 1]} : vector<2x16x2xbf16> to vector<1x16x2xbf16>
    %278 = vector.shape_cast %277 : vector<1x16x2xbf16> to vector<16x2xbf16>
    %cst_130 = arith.constant dense<0.000000e+00> : vector<2x2xf32>
    %279 = tpu.matmul %232, %278, %cst_130 {dimension_numbers = #tpu.dot_dimension_numbers<[1], [0], [0], [1], [0, 0, 1, 1], [], []>} : vector<2x16xbf16>, vector<16x2xbf16>, vector<2x2xf32> -> vector<2x2xf32>
    %280 = vector.extract_strided_slice %245 {offsets = [1, 0, 0], sizes = [1, 16, 2], strides = [1, 1, 1]} : vector<2x16x2xbf16> to vector<1x16x2xbf16>
    %281 = vector.shape_cast %280 : vector<1x16x2xbf16> to vector<16x2xbf16>
    %cst_131 = arith.constant dense<0.000000e+00> : vector<2x2xf32>
    %282 = tpu.matmul %235, %281, %cst_131 {dimension_numbers = #tpu.dot_dimension_numbers<[1], [0], [0], [1], [0, 0, 1, 1], [], []>} : vector<2x16xbf16>, vector<16x2xbf16>, vector<2x2xf32> -> vector<2x2xf32>
    %cst_132 = arith.constant 5.000000e-01 : f32
    %283 = vector.broadcast %cst_132 : f32 to vector<2x2xf32>
    %284 = arith.cmpf olt, %282, %283 : vector<2x2xf32>
    %285 = arith.extui %284 : vector<2x2xi1> to vector<2x2xi32>
    %286 = arith.sitofp %285 : vector<2x2xi32> to vector<2x2xf32>
    %287 = math.absf %276 : vector<2x2xf32>
    %288 = math.absf %279 : vector<2x2xf32>
    %289 = arith.addf %287, %288 : vector<2x2xf32>
    %290 = arith.mulf %289, %286 : vector<2x2xf32>
    %291 = vector.shape_cast %290 : vector<2x2xf32> to vector<1x2x2xf32>
    %cst_133 = arith.constant dense<0.000000e+00> : vector<1xf32>
    %292 = vector.multi_reduction <add>, %291, %cst_133 [1, 2] : vector<1x2x2xf32> to vector<1xf32>
    %293 = vector.shape_cast %292 : vector<1xf32> to vector<1x1x1xf32>
    %294 = vector.extract %293[0, 0, 0] : f32 from vector<1x1x1xf32>
    %295 = arith.addf %267, %294 : f32
    %296 = vector.shape_cast %286 : vector<2x2xf32> to vector<1x2x2xf32>
    %cst_134 = arith.constant dense<0.000000e+00> : vector<1xf32>
    %297 = vector.multi_reduction <add>, %296, %cst_134 [1, 2] : vector<1x2x2xf32> to vector<1xf32>
    %298 = vector.shape_cast %297 : vector<1xf32> to vector<1x1x1xf32>
    %299 = vector.extract %298[0, 0, 0] : f32 from vector<1x1x1xf32>
    %cst_135 = arith.constant 2.000000e+00 : f32
    %300 = arith.mulf %cst_135, %299 : f32
    %301 = arith.addf %273, %300 : f32
    %c0_136 = arith.constant 0 : index
    %c3 = arith.constant 3 : index
    %302 = memref.load %arg27[%c0_136, %c3] : memref<1x8xf32, #tpu.memory_space<smem>>
    memref.store %295, %arg27[%c0_136, %c3] : memref<1x8xf32, #tpu.memory_space<smem>>
    %c0_137 = arith.constant 0 : index
    %c7 = arith.constant 7 : index
    %303 = memref.load %arg27[%c0_137, %c7] : memref<1x8xf32, #tpu.memory_space<smem>>
    memref.store %301, %arg27[%c0_137, %c7] : memref<1x8xf32, #tpu.memory_space<smem>>
    return
  }
  func.func @transform_0(%arg0: i32) -> (i32, i32, i32) {
    %c0_i32 = arith.constant 0 : i32
    %c0_i32_0 = arith.constant 0 : i32
    %c0_i32_1 = arith.constant 0 : i32
    return %arg0, %c0_i32, %c0_i32_0 : i32, i32, i32
  }
  func.func @transform_1(%arg0: i32) -> (i32, i32, i32) {
    %c0_i32 = arith.constant 0 : i32
    %c0_i32_0 = arith.constant 0 : i32
    %c0_i32_1 = arith.constant 0 : i32
    return %arg0, %c0_i32, %c0_i32_0 : i32, i32, i32
  }
  func.func @transform_2(%arg0: i32) -> (i32, i32) {
    %c0_i32 = arith.constant 0 : i32
    %c0_i32_0 = arith.constant 0 : i32
    %c0_i32_1 = arith.constant 0 : i32
    return %c0_i32, %c0_i32_0 : i32, i32
  }
  func.func @transform_3(%arg0: i32) -> (i32, i32) {
    %c0_i32 = arith.constant 0 : i32
    %c0_i32_0 = arith.constant 0 : i32
    %c0_i32_1 = arith.constant 0 : i32
    return %c0_i32, %c0_i32_0 : i32, i32
  }
  func.func @transform_4(%arg0: i32) -> (i32, i32) {
    %c0_i32 = arith.constant 0 : i32
    %c0_i32_0 = arith.constant 0 : i32
    %c0_i32_1 = arith.constant 0 : i32
    return %c0_i32, %c0_i32_0 : i32, i32
  }
  func.func @transform_5(%arg0: i32) -> (i32, i32) {
    %c0_i32 = arith.constant 0 : i32
    %c0_i32_0 = arith.constant 0 : i32
    %c0_i32_1 = arith.constant 0 : i32
    return %c0_i32, %c0_i32_0 : i32, i32
  }
  func.func @transform_6(%arg0: i32) -> (i32, i32) {
    %c0_i32 = arith.constant 0 : i32
    %c0_i32_0 = arith.constant 0 : i32
    %c0_i32_1 = arith.constant 0 : i32
    return %c0_i32, %c0_i32_0 : i32, i32
  }
  func.func @transform_7(%arg0: i32) -> (i32, i32) {
    %c0_i32 = arith.constant 0 : i32
    %c0_i32_0 = arith.constant 0 : i32
    %c0_i32_1 = arith.constant 0 : i32
    return %c0_i32, %c0_i32_0 : i32, i32
  }
  func.func @transform_8(%arg0: i32) -> (i32, i32) {
    %c0_i32 = arith.constant 0 : i32
    %c0_i32_0 = arith.constant 0 : i32
    %c0_i32_1 = arith.constant 0 : i32
    return %c0_i32, %c0_i32_0 : i32, i32
  }
  func.func @transform_9(%arg0: i32) -> (i32, i32) {
    %c0_i32 = arith.constant 0 : i32
    %c0_i32_0 = arith.constant 0 : i32
    %c0_i32_1 = arith.constant 0 : i32
    return %c0_i32, %c0_i32_0 : i32, i32
  }
  func.func @transform_10(%arg0: i32) -> (i32, i32) {
    %c0_i32 = arith.constant 0 : i32
    %c0_i32_0 = arith.constant 0 : i32
    %c0_i32_1 = arith.constant 0 : i32
    return %c0_i32, %c0_i32_0 : i32, i32
  }
  func.func @transform_11(%arg0: i32) -> (i32, i32) {
    %c0_i32 = arith.constant 0 : i32
    %c0_i32_0 = arith.constant 0 : i32
    %c0_i32_1 = arith.constant 0 : i32
    return %c0_i32, %c0_i32_0 : i32, i32
  }
  func.func @transform_12(%arg0: i32) -> (i32, i32) {
    %c0_i32 = arith.constant 0 : i32
    %c0_i32_0 = arith.constant 0 : i32
    %c0_i32_1 = arith.constant 0 : i32
    return %c0_i32, %c0_i32_0 : i32, i32
  }
  func.func @transform_13(%arg0: i32) -> (i32, i32) {
    %c0_i32 = arith.constant 0 : i32
    %c0_i32_0 = arith.constant 0 : i32
    %c0_i32_1 = arith.constant 0 : i32
    return %c0_i32, %c0_i32_0 : i32, i32
  }
  func.func @transform_14(%arg0: i32) -> (i32, i32) {
    %c0_i32 = arith.constant 0 : i32
    %c0_i32_0 = arith.constant 0 : i32
    %c0_i32_1 = arith.constant 0 : i32
    return %c0_i32, %c0_i32_0 : i32, i32
  }
  func.func @transform_15(%arg0: i32) -> (i32, i32) {
    %c0_i32 = arith.constant 0 : i32
    %c0_i32_0 = arith.constant 0 : i32
    %c0_i32_1 = arith.constant 0 : i32
    return %c0_i32, %c0_i32_0 : i32, i32
  }
  func.func @transform_16(%arg0: i32) -> (i32, i32) {
    %c0_i32 = arith.constant 0 : i32
    %c0_i32_0 = arith.constant 0 : i32
    %c0_i32_1 = arith.constant 0 : i32
    return %c0_i32, %c0_i32_0 : i32, i32
  }
  func.func @transform_17(%arg0: i32) -> (i32, i32) {
    %c0_i32 = arith.constant 0 : i32
    %c0_i32_0 = arith.constant 0 : i32
    %c0_i32_1 = arith.constant 0 : i32
    return %c0_i32, %c0_i32_0 : i32, i32
  }
  func.func @transform_18(%arg0: i32) -> (i32, i32) {
    %c0_i32 = arith.constant 0 : i32
    %c0_i32_0 = arith.constant 0 : i32
    %c0_i32_1 = arith.constant 0 : i32
    return %c0_i32, %c0_i32_0 : i32, i32
  }
  func.func @transform_19(%arg0: i32) -> (i32, i32) {
    %c0_i32 = arith.constant 0 : i32
    %c0_i32_0 = arith.constant 0 : i32
    %c0_i32_1 = arith.constant 0 : i32
    return %c0_i32, %c0_i32_0 : i32, i32
  }
  func.func @transform_20(%arg0: i32) -> (i32, i32) {
    %c0_i32 = arith.constant 0 : i32
    %c0_i32_0 = arith.constant 0 : i32
    %c0_i32_1 = arith.constant 0 : i32
    return %c0_i32, %c0_i32_0 : i32, i32
  }
  func.func @transform_21(%arg0: i32) -> (i32, i32) {
    %c0_i32 = arith.constant 0 : i32
    %c0_i32_0 = arith.constant 0 : i32
    %c0_i32_1 = arith.constant 0 : i32
    return %c0_i32, %c0_i32_0 : i32, i32
  }
  func.func @transform_22(%arg0: i32) -> (i32, i32) {
    %c0_i32 = arith.constant 0 : i32
    %c0_i32_0 = arith.constant 0 : i32
    %c0_i32_1 = arith.constant 0 : i32
    return %c0_i32, %c0_i32_0 : i32, i32
  }
  func.func @transform_23(%arg0: i32) -> (i32, i32) {
    %c0_i32 = arith.constant 0 : i32
    %c0_i32_0 = arith.constant 0 : i32
    %c0_i32_1 = arith.constant 0 : i32
    return %c0_i32, %c0_i32_0 : i32, i32
  }
  func.func @transform_24(%arg0: i32) -> (i32, i32) {
    %c0_i32 = arith.constant 0 : i32
    %c0_i32_0 = arith.constant 0 : i32
    %c0_i32_1 = arith.constant 0 : i32
    return %c0_i32, %c0_i32_0 : i32, i32
  }
  func.func @transform_25(%arg0: i32) -> (i32, i32) {
    %c0_i32 = arith.constant 0 : i32
    %c0_i32_0 = arith.constant 0 : i32
    %c0_i32_1 = arith.constant 0 : i32
    return %c0_i32, %c0_i32_0 : i32, i32
  }
  func.func @transform_26(%arg0: i32) -> (i32, i32) {
    %c0_i32 = arith.constant 0 : i32
    %c0_i32_0 = arith.constant 0 : i32
    return %arg0, %c0_i32 : i32, i32
  }
}

</mosaic_0001>

<bundles_post_ra>
// kernel: tpu_custom_call.1
= control target key start
LH: loop header
LB: loop body
LE: loop exit
PB: predicated region body
PF: predicated region fallthrough
CT: control target
= control target key end

     0   :  { %s3131_s0 = inlined_call_operand.vmem [shape: f32[2,16,16], index: 0, kind: input, shape index: {}]   ;;  %s3132_s1 = inlined_call_operand.vmem [shape: f32[2,16,16], index: 1, kind: input, shape index: {}]   ;;  %s3133_s2 = inlined_call_operand.vmem [shape: bf16[16,16], index: 2, kind: input, shape index: {}]   ;;  %s3134_s3 = inlined_call_operand.vmem [shape: bf16[16,16], index: 3, kind: input, shape index: {}]   ;;  %s3135_s4 = inlined_call_operand.vmem [shape: bf16[16,16], index: 4, kind: input, shape index: {}]   ;;  %s3136_s5 = inlined_call_operand.vmem [shape: bf16[16,16], index: 5, kind: input, shape index: {}]   ;;  %s3137_s6 = inlined_call_operand.vmem [shape: bf16[16,16], index: 6, kind: input, shape index: {}]   ;;  %s3138_s7 = inlined_call_operand.vmem [shape: bf16[16,16], index: 7, kind: input, shape index: {}]   ;;  %s3139_s8 = inlined_call_operand.hbm [shape: bf16[8,16], index: 8, kind: input, shape index: {}]   ;;  %s3140_s9 = inlined_call_operand.hbm [shape: bf16[8,16], index: 9, kind: input, shape index: {}]   ;;  %s3141_s10 = inlined_call_operand.vmem [shape: bf16[16,8], index: 10, kind: input, shape index: {}]   ;;  %s3142_s11 = inlined_call_operand.vmem [shape: bf16[16,8], index: 11, kind: input, shape index: {}]   ;;  %s3143_s12 = inlined_call_operand.vmem [shape: bf16[8,16], index: 12, kind: input, shape index: {}]   ;;  %s3144_s13 = inlined_call_operand.vmem [shape: bf16[16,8], index: 13, kind: input, shape index: {}]   ;;  %s3145_s14 = inlined_call_operand.vmem [shape: bf16[4,16], index: 14, kind: input, shape index: {}]   ;;  %s3146_s15 = inlined_call_operand.vmem [shape: bf16[4,16], index: 15, kind: input, shape index: {}]   ;;  %s3147_s16 = inlined_call_operand.vmem [shape: bf16[16,4], index: 16, kind: input, shape index: {}]   ;;  %s3148_s17 = inlined_call_operand.vmem [shape: bf16[16,4], index: 17, kind: input, shape index: {}]   ;;  %s3149_s18 = inlined_call_operand.vmem [shape: bf16[4,16], index: 18, kind: input, shape index: {}]   ;;  %s3150_s19 = inlined_call_operand.vmem [shape: bf16[16,4], index: 19, kind: input, shape index: {}]   ;;  %s3151_s20 = inlined_call_operand.vmem [shape: bf16[2,16], index: 20, kind: input, shape index: {}]   ;;  %s3152_s21 = inlined_call_operand.vmem [shape: bf16[2,16], index: 21, kind: input, shape index: {}]   ;;  %s3153_s22 = inlined_call_operand.vmem [shape: bf16[16,2], index: 22, kind: input, shape index: {}]   ;;  %s3154_s23 = inlined_call_operand.vmem [shape: bf16[16,2], index: 23, kind: input, shape index: {}]   ;;  %s3155_s24 = inlined_call_operand.vmem [shape: bf16[2,16], index: 24, kind: input, shape index: {}]   ;;  %s3156_s25 = inlined_call_operand.vmem [shape: bf16[16,2], index: 25, kind: input, shape index: {}]   ;;  %s3157_s26 = inlined_call_operand.hbm [shape: f32[1,8], index: 26, kind: output, shape index: {}]  }
   0x1   :  { %3162 = sst [smem:[#allocation11_spill]] %s3131_s0 }
   0x2   :  { %3163 = sst [smem:[#allocation12_spill]] %s3132_s1 }
   0x3   :  { %3164 = sst [smem:[#allocation13_spill]] %s3133_s2 }
   0x4   :  { %3165 = sst [smem:[#allocation14_spill]] %s3134_s3 }
   0x5   :  { %3166 = sst [smem:[#allocation15_spill]] %s3135_s4 }
   0x6   :  { %3167 = sst [smem:[#allocation16_spill]] %s3136_s5 }
   0x7   :  { %3168 = sst [smem:[#allocation17_spill]] %s3137_s6 }
   0x8   :  { %3169 = sst [smem:[#allocation18_spill]] %s3138_s7 }
   0x9   :  { %3170 = sst [smem:[#allocation19_spill]] %s3139_s8 }
   0xa   :  { %3171 = sst [smem:[#allocation20_spill]] %s3140_s9 }
   0xb   :  { %3172 = sst [smem:[#allocation21_spill]] %s3141_s10 }
   0xc   :  { %31 = vsyncpa [#allocation3], 0 }
   0xd   :  { %32 = vsyncpa [#allocation6], 0 }
   0xe   :  { %33 = vsyncpa [#allocation4], 0  ;;  %s2679_s27 = smov [#allocation2]   ;;  %s2680_s7 = smov [#allocation5]  }
   0xf   :  { %s56_s3 = sshll.u32 %s2679_s27, 4  ;;  %s66_s28 = sshll.u32 %s2680_s7, 4  ;;  %s57_s3 = int_to_ptr.vmem [resolvable:$true] %s56_s3  ;;  %s67_s28 = int_to_ptr.vmem [resolvable:$true] %s66_s28 }
  0x10   :  { %s3173_s29 = sld [smem:[#allocation19_spill]] }
  0x16   :  { %s2619_s0 = scalar_lea.hbm %s3173_s29, 64 }
  0x17   :  { %p2620_p0 = scmp.ne.s32.totalorder %s3173_s29, %s2619_s0  ;;  %p2623_p1 = scmp.lt.u32.totalorder %s2619_s0, %s3173_s29 }
  0x19   :  { %p2625_p2 = pnand %p2623_p1, %p2620_p0 }
  0x1b   :  { %2628 = shalt.err (!%p2625_p2)
}
  0x1c   :  { %s2629_s10 = scalar_lea.vmem %s57_s3, 64  ;;  %p2634_p4 = scmp.lt.s32.totalorder %s57_s3, %s57_s3 }
  0x1d   :  { %p2630_p3 = scmp.ne.s32.totalorder %s57_s3, %s2629_s10  ;;  %p2635_p5 = scmp.lt.s32.totalorder %s2629_s10, %s2629_s10 }
  0x1f   :  { %p2636_p6 = por %p2635_p5, %p2634_p4 }
  0x21   :  { %p2637_p7 = pnand %p2636_p6, %p2630_p3 }
  0x23   :  { %2640 = shalt.err (!%p2637_p7)
}
  0x24   :  { %59 = dma.hbm_to_vmem [thread:$0]  %s3173_s29, 64, %s57_s3, [#allocation3]  }
  0x25   :  { %s3174_s8 = sld [smem:[#allocation20_spill]] }
  0x2b   :  { %s2641_s4 = scalar_lea.hbm %s3174_s8, 64 }
  0x2c   :  { %p2642_p8 = scmp.ne.s32.totalorder %s3174_s8, %s2641_s4  ;;  %p2645_p9 = scmp.lt.u32.totalorder %s2641_s4, %s3174_s8 }
  0x2e   :  { %p2647_p10 = pnand %p2645_p9, %p2642_p8 }
  0x30   :  { %2650 = shalt.err (!%p2647_p10)
}
  0x31   :  { %s2651_s5 = scalar_lea.vmem %s67_s28, 64  ;;  %p2656_p12 = scmp.lt.s32.totalorder %s67_s28, %s67_s28 }
  0x32   :  { %p2652_p11 = scmp.ne.s32.totalorder %s67_s28, %s2651_s5  ;;  %p2657_p13 = scmp.lt.s32.totalorder %s2651_s5, %s2651_s5 }
  0x34   :  { %p2658_p0 = por %p2657_p13, %p2656_p12 }
  0x36   :  { %p2659_p1 = pnand %p2658_p0, %p2652_p11 }
  0x38   :  { %2662 = shalt.err (!%p2659_p1)
}
  0x39   :  { %69 = dma.hbm_to_vmem [thread:$0]  %s3174_s8, 64, %s67_s28, [#allocation6]  }
  0x3a   :  { %2673 = dma.done.wait [#allocation3], 64  }
  0x3b   :  { %2674 = vsyncadd [#allocation3], 4294967232 }
  0x3c   :  { %2675 = dma.done.wait [#allocation6], 64  }
  0x3d   :  { %2676 = vsyncadd [#allocation6], 4294967232  ;;  %s3175_s1 = sld [smem:[#allocation16_spill]]  ;;  %s3176_s4 = sld [smem:[#allocation15_spill]]  ;;  %vm159_vm1 = vcmask 130048   ;;  %v2681_v15 = vmov 0.0  }
  0x3e   :  { %s3177_s0 = sld [smem:[#allocation11_spill]]  ;;  %s3178_s3 = sld [smem:[#allocation12_spill]]  ;;  %vm2682_vm5 = vmmov 0   ;;  %v2610_v49 = vld [vmem:[%s3142_s11] sm:$0xff]   ;;  %vm1009_vm10 = vcmask 64512   ;;  %vm1503_vm13 = vcmask 27648  }
  0x3f   :  { %s3179_s8 = sld [smem:[#allocation18_spill]]  ;;  %s3180_s29 = sld [smem:[#allocation13_spill]]  ;;  %v2612_v51 = vld [vmem:[%s3144_s13] sm:$0xff]  }
  0x40   :  { %s3183_s28 = sld [smem:[#allocation21_spill]] }
  0x43   :  { %v2604_v0 = vld [vmem:[%s3175_s1] sm:$0xff]   ;;  %s3181_s1 = sld [smem:[#allocation14_spill]] }
  0x44   :  { %v2605_v1 = vld [vmem:[%s3176_s4] sm:$0xff]   ;;  %2351 = vmatprep.subr.bf16.mxu0 %v2604_v0  ;;  %v110_v3 = vld [vmem:[%s3177_s0 + $0x8] sm:$0xff]  ;;  %v111_v7 = vld [vmem:[%s3177_s0 + $0x10] sm:$0xff]  ;;  %s3182_s4 = sld [smem:[#allocation17_spill]] }
  0x45   :  { %v109_v2 = vld [vmem:[%s3177_s0] sm:$0xff]  ;;  %2357 = vmatprep.subr.bf16.mxu1 %v2605_v1  ;;  %2352 = vmatpush3.bf16.msra.mxu0 %v2604_v0  ;;  %v114_v5 = vld [vmem:[%s3178_s3 + $0x8] sm:$0xff]  ;;  %v112_v8 = vld [vmem:[%s3177_s0 + $0x18] sm:$0xff] }
  0x46   :  { %v113_v4 = vld [vmem:[%s3178_s3] sm:$0xff]  ;;  %2358 = vmatpush3.bf16.msra.mxu1 %v2605_v1  ;;  %v118_v9 = vsub.f32 %v110_v3, %v114_v5  ;;  %v115_v10 = vld [vmem:[%s3178_s3 + $0x10] sm:$0xff]  ;;  %v116_v11 = vld [vmem:[%s3178_s3 + $0x18] sm:$0xff] }
  0x47   :  { %v117_v6 = vsub.f32 %v109_v2, %v113_v4  ;;  %v119_v12 = vsub.f32 %v111_v7, %v115_v10  ;;  %v120_v13 = vsub.f32 %v112_v8, %v116_v11  ;;  %v2606_v14 = vld [vmem:[%s3179_s8] sm:$0xff]   ;;  %2369 = vmatprep.subr.bf16.mxu1 %v2681_v15 }
  0x48   :  { %vm122_vm2 = vcmp.ne.f32.partialorder %v118_v9, %v118_v9  ;;  %2363 = vmatprep.subr.bf16.mxu0 %v2606_v14  ;;  %v2607_v40 = vld [vmem:[%s3180_s29] sm:$0xff]  }
  0x49   :  { %vm121_vm0 = vcmp.ne.f32.partialorder %v117_v6, %v117_v6  ;;  %v126_v18 = vsel %vm122_vm2, 0.0, %v118_v9  ;;  %vm123_vm3 = vcmp.ne.f32.partialorder %v119_v12, %v119_v12  ;;  %vm124_vm4 = vcmp.ne.f32.partialorder %v120_v13, %v120_v13  ;;  %v2608_v41 = vld [vmem:[%s3181_s1] sm:$0xff]  }
  0x4a   :  { %v125_v16 = vsel %vm121_vm0, 0.0, %v117_v6  ;;  %v2190_v17 = vsel %vm121_vm0, 1.0, %v2681_v15  ;;  %v2191_v19 = vsel %vm122_vm2, 1.0, %v2681_v15  ;;  %v127_v21 = vsel %vm123_vm3, 0.0, %v119_v12  ;;  %v2609_v48 = vld [vmem:[%s3182_s4] sm:$0xff]  }
  0x4b   :  { %v2879_v20 = vpack.c.bf16 %v126_v18, %v125_v16  ;;  %v128_v22 = vsel %vm124_vm4, 0.0, %v120_v13  ;;  %v2881_v23 = vpack.c.bf16 %v2191_v19, %v2190_v17  ;;  %v2192_v25 = vsel %vm123_vm3, 1.0, %v2681_v15  ;;  %v2611_v50 = vld [vmem:[%s3183_s28] sm:$0xff]  }
  0x4c   :  { %v2883_v24 = vpack.c.bf16 %v128_v22, %v127_v21  ;;  %v2193_v26 = vsel %vm124_vm4, 1.0, %v2681_v15  ;;  %vm1997_vm0 = vcmask 9216  }
  0x4d   :  { %2353 = vmatprep.mubr.msk.bf16.mxu0 %vm159_vm1, %v2879_v20  ;;  %2359 = vmatprep.mubr.msk.bf16.mxu1 %vm159_vm1, %v2879_v20  ;;  %v2898_v27 = vpack.c.bf16 %v2193_v26, %v2192_v25 }
  0x4e   :  { %2354 = vmatmul.mubr.msk.bf16.vlgmr.msra.gmra.mrb[0].mxu0 %vm159_vm1, %v2883_v24  ;;  %2360 = vmatmul.mubr.msk.bf16.vlgmr.msra.gmra.mrb[0].mxu1 %vm159_vm1, %v2883_v24 }
  0x4f   :  { %2364 = vmatpush3.bf16.msra.mxu0 %v2606_v14  ;;  %2365 = vmatprep.mubr.msk.bf16.mxu0 %vm159_vm1, %v2881_v23 }
  0x50   :  { %2375 = vmatprep.subr.bf16.mxu0 %v2681_v15  ;;  %2371 = vmatprep.mubr.msk.bf16.mxu1 %vm2682_vm5, %v2681_v15 }
  0x56   :  { %2366 = vmatmul.mubr.msk.bf16.vlgmr.msra.gmra.mrb[4].mxu0 %vm159_vm1, %v2898_v27 }
  0x57   :  { %2377 = vmatprep.mubr.msk.bf16.mxu0 %vm2682_vm5, %v2681_v15 }
 0x121   :  { %v2355_v28 = vpop.f32.mrb[0].mxu0  ;;  %v2361_v29 = vpop.f32.mrb[0].mxu1 }
 0x122   :  { %v200_v30 = vpop.f32.mrb[1].mxu0  ;;  %v257_v31 = vpop.f32.mrb[1].mxu1 }
 0x123   :  { %v2356_v32 = vpop.f32.mrb[2].mxu0  ;;  %v2362_v33 = vpop.f32.mrb[2].mxu1 }
 0x124   :  { %v216_v34 = vpack.c.bf16 %v2356_v32, %v2355_v28  ;;  %v273_v35 = vpack.c.bf16 %v2362_v33, %v2361_v29  ;;  %v203_v36 = vpop.f32.mrb[3].mxu0  ;;  %v260_v37 = vpop.f32.mrb[3].mxu1 }
 0x125   :  { %v215_v38 = vpack.c.bf16 %v203_v36, %v200_v30  ;;  %v272_v39 = vpack.c.bf16 %v260_v37, %v257_v31 }
 0x127   :  { %2370 = vmatpush3.bf16.msra.mxu1 %v215_v38  ;;  %2376 = vmatpush3.bf16.msra.mxu0 %v272_v39 }
 0x128   :  { %2387 = vmatprep.subr.bf16.mxu0 %v2681_v15  ;;  %2381 = vmatprep.subr.bf16.mxu1 %v2681_v15 }
 0x129   :  { %v2367_v42 = vpop.f32.mrb[4].mxu0 }
 0x12a   :  { %v320_v43 = vpop.f32.mrb[5].mxu0  ;;  %2372 = vmatmul.mubr.msk.bf16.vlgmr.msra.gmra.mrb[4].mxu1 %vm159_vm1, %v2607_v40  ;;  %2378 = vmatmul.mubr.msk.bf16.vlgmr.msra.gmra.mrb[8].mxu0 %vm159_vm1, %v2608_v41 }
 0x12b   :  { %v2368_v44 = vpop.f32.mrb[6].mxu0  ;;  %2388 = vmatpush3.bf16.msra.mxu0 %v216_v34  ;;  %2383 = vmatprep.mubr.msk.bf16.mxu1 %vm2682_vm5, %v2681_v15 }
 0x12c   :  { %v336_v45 = vpack.c.bf16 %v2368_v44, %v2367_v42  ;;  %v323_v46 = vpop.f32.mrb[7].mxu0  ;;  %2389 = vmatprep.mubr.msk.bf16.mxu0 %vm2682_vm5, %v2681_v15  ;;  %2399 = vmatprep.subr.bf16.mxu0 %v2681_v15 }
 0x12d   :  { %v335_v47 = vpack.c.bf16 %v323_v46, %v320_v43 }
 0x12f   :  { %2382 = vmatpush3.bf16.msra.mxu1 %v335_v47 }
 0x130   :  { %2393 = vmatprep.subr.bf16.mxu1 %v2681_v15 }
 0x132   :  { %2384 = vmatmul.mubr.msk.bf16.vlgmr.msra.gmra.mrb[8].mxu1 %vm159_vm1, %v2609_v48  ;;  %2390 = vmatmul.mubr.msk.bf16.vlgmr.msra.gmra.mrb[12].mxu0 %vm159_vm1, %v2607_v40 }
 0x133   :  { %2400 = vmatpush3.bf16.msra.mxu0 %v336_v45  ;;  %2394 = vmatpush3.bf16.msra.mxu1 %v273_v35 }
 0x134   :  { %2395 = vmatprep.mubr.msk.bf16.mxu1 %vm2682_vm5, %v2681_v15  ;;  %2401 = vmatprep.mubr.msk.bf16.mxu0 %vm2682_vm5, %v2681_v15 }
 0x135   :  { %2405 = vmatprep.subr.bf16.mxu1 %v2610_v49  ;;  %2411 = vmatprep.subr.bf16.mxu0 %v2611_v50 }
 0x13a   :  { %2396 = vmatmul.mubr.msk.bf16.vlgmr.msra.gmra.mrb[12].mxu1 %vm159_vm1, %v2608_v41  ;;  %2402 = vmatmul.mubr.msk.bf16.vlgmr.msra.gmra.mrb[16].mxu0 %vm159_vm1, %v2609_v48 }
 0x13b   :  { %2406 = vmatpush3.bf16.msra.mxu1 %v2610_v49  ;;  %2412 = vmatpush3.bf16.msra.mxu0 %v2611_v50 }
 0x13c   :  { %2407 = vmatprep.mubr.msk.bf16.mxu1 %vm159_vm1, %v2879_v20  ;;  %2413 = vmatprep.mubr.msk.bf16.mxu0 %vm159_vm1, %v2879_v20 }
 0x13d   :  { %2417 = vmatprep.subr.bf16.mxu1 %v2612_v51  ;;  %2423 = vmatprep.subr.bf16.mxu0 %v2681_v15 }
 0x142   :  { %2408 = vmatmul.mubr.msk.bf16.vlgmr.msra.gmra.mrb[16].mxu1 %vm159_vm1, %v2883_v24  ;;  %2414 = vmatmul.mubr.msk.bf16.vlgmr.msra.gmra.mrb[20].mxu0 %vm159_vm1, %v2883_v24 }
 0x143   :  { %2418 = vmatpush3.bf16.msra.mxu1 %v2612_v51  ;;  %2419 = vmatprep.mubr.msk.bf16.mxu1 %vm159_vm1, %v2881_v23 }
 0x144   :  { %2429 = vmatprep.subr.bf16.mxu1 %v2681_v15  ;;  %2425 = vmatprep.mubr.msk.bf16.mxu0 %vm2682_vm5, %v2681_v15 }
 0x14a   :  { %2420 = vmatmul.mubr.msk.bf16.vlgmr.msra.gmra.mrb[20].mxu1 %vm159_vm1, %v2898_v27 }
 0x14b   :  { %2431 = vmatprep.mubr.msk.bf16.mxu1 %vm2682_vm5, %v2681_v15 }
 0x1fd   :  { %v379_v52 = vpop.f32.mrb[4].mxu1  ;;  %v428_v53 = vpop.f32.mrb[8].mxu0 }
 0x1fe   :  { %v490_v54 = vand.u32 2147483647, %v379_v52  ;;  %v492_v55 = vand.u32 2147483647, %v428_v53  ;;  %v2373_v56 = vpop.f32.mrb[5].mxu1  ;;  %v2379_v57 = vpop.f32.mrb[9].mxu0 }
 0x1ff   :  { %v382_v58 = vpop.f32.mrb[6].mxu1  ;;  %v431_v59 = vpop.f32.mrb[10].mxu0 }
 0x200   :  { %v494_v60 = vadd.f32 %v492_v55, %v490_v54  ;;  %v491_v61 = vand.u32 2147483647, %v382_v58  ;;  %v493_v62 = vand.u32 2147483647, %v431_v59  ;;  %v2374_v63 = vpop.f32.mrb[7].mxu1  ;;  %v2380_v0 = vpop.f32.mrb[11].mxu0 }
 0x202   :  { %v495_v1 = vadd.f32 %v493_v62, %v491_v61  ;;  %v693_v61 = vld [vmem:[#allocation2] sm:$0xf]  ;;  %v694_v62 = vld [vmem:[#allocation5] sm:$0xf] }
 0x205   :  { %v477_v2 = vpop.f32.mrb[8].mxu1  ;;  %v559_v3 = vpop.f32.mrb[12].mxu0 }
 0x206   :  { %vm484_vm6 = vcmp.lt.f32.partialorder %v477_v2, 0.5  ;;  %v2385_v4 = vpop.f32.mrb[9].mxu1  ;;  %v2391_v5 = vpop.f32.mrb[13].mxu0  ;;  %v654_v21 = vand.u32 2147483647, %v559_v3 }
 0x207   :  { %v2209_v6 = vsel %vm484_vm6, 1.0, %v2681_v15  ;;  %v480_v7 = vpop.f32.mrb[10].mxu1  ;;  %v562_v8 = vpop.f32.mrb[14].mxu0  ;;  %v699_v5 = vld [vmem:[%s3143_s12] sm:$0xf] }
 0x208   :  { %v496_v9 = vmul.f32 %v2209_v6, %v494_v60  ;;  %vm485_vm7 = vcmp.lt.f32.partialorder %v480_v7, 0.5  ;;  %v2386_v10 = vpop.f32.mrb[11].mxu1  ;;  %v2392_v11 = vpop.f32.mrb[15].mxu0  ;;  %v511_v14 = vsel %vm159_vm1, %v2209_v6, 0.0  ;;  %v655_v31 = vand.u32 2147483647, %v562_v8 }
 0x209   :  { %v2210_v12 = vsel %vm485_vm7, 1.0, %v2681_v15  ;;  %v2613_v6 = vld [vmem:[%s3148_s17] sm:$0xff]  }
 0x20a   :  { %v497_v13 = vmul.f32 %v2210_v12, %v495_v1  ;;  %v512_v16 = vsel %vm159_vm1, %v2210_v12, 0.0  ;;  %v498_v18 = vsel %vm159_vm1, %v496_v9, 0.0  ;;  %v2614_v7 = vld [vmem:[%s3147_s16] sm:$0xff]  }
 0x20b   :  { %v513_v17 = vadd.f32 %v512_v16, %v511_v14  ;;  %v2615_v8 = vld [vmem:[%s3150_s19] sm:$0xff]  }
 0x20c   :  { %v499_v19 = vsel %vm159_vm1, %v497_v13, 0.0 }
 0x20d   :  { %v641_v22 = vpop.f32.mrb[16].mxu0  ;;  %514 = vadd.xlane.f32.xlu0 %v513_v17  ;;  %v600_v25 = vpop.f32.mrb[12].mxu1  ;;  %v500_v26 = vadd.f32 %v499_v19, %v498_v18 }
 0x20e   :  { %vm648_vm8 = vcmp.lt.f32.partialorder %v641_v22, 0.5  ;;  %v656_v28 = vand.u32 2147483647, %v600_v25  ;;  %v2397_v29 = vpop.f32.mrb[13].mxu1  ;;  %v2403_v30 = vpop.f32.mrb[17].mxu0 }
 0x20f   :  { %v2214_v32 = vsel %vm648_vm8, 1.0, %v2681_v15  ;;  %v603_v33 = vpop.f32.mrb[14].mxu1  ;;  %v644_v34 = vpop.f32.mrb[18].mxu0 }
 0x210   :  { %v658_v35 = vadd.f32 %v656_v28, %v654_v21  ;;  %v657_v36 = vand.u32 2147483647, %v603_v33  ;;  %vm649_vm9 = vcmp.lt.f32.partialorder %v644_v34, 0.5  ;;  %v2398_v37 = vpop.f32.mrb[15].mxu1  ;;  %v2404_v38 = vpop.f32.mrb[19].mxu0  ;;  %v675_v39 = vsel %vm159_vm1, %v2214_v32, 0.0 }
 0x211   :  { %v2215_v40 = vsel %vm649_vm9, 1.0, %v2681_v15  ;;  %501 = vadd.xlane.f32.xlu0 %v500_v26 }
 0x212   :  { %v659_v41 = vadd.f32 %v657_v36, %v655_v31  ;;  %v676_v42 = vsel %vm159_vm1, %v2215_v40, 0.0  ;;  %v660_v43 = vmul.f32 %v2214_v32, %v658_v35 }
 0x213   :  { %v677_v44 = vadd.f32 %v676_v42, %v675_v39 }
 0x214   :  { %v661_v45 = vmul.f32 %v2215_v40, %v659_v41  ;;  %v662_v50 = vsel %vm159_vm1, %v660_v43, 0.0 }
 0x215   :  { %678 = vadd.xlane.f32.xlu1 %v677_v44  ;;  %v2409_v46 = vpop.f32.mrb[16].mxu1  ;;  %v2415_v47 = vpop.f32.mrb[20].mxu0 }
 0x216   :  { %v742_v48 = vpop.f32.mrb[17].mxu1  ;;  %v799_v49 = vpop.f32.mrb[21].mxu0  ;;  %v663_v51 = vsel %vm159_vm1, %v661_v45, 0.0 }
 0x217   :  { %v2410_v52 = vpop.f32.mrb[18].mxu1  ;;  %v2416_v53 = vpop.f32.mrb[22].mxu0  ;;  %v664_v54 = vadd.f32 %v663_v51, %v662_v50 }
 0x218   :  { %v758_v55 = vpack.c.bf16 %v2410_v52, %v2409_v46  ;;  %v815_v56 = vpack.c.bf16 %v2416_v53, %v2415_v47  ;;  %v745_v57 = vpop.f32.mrb[19].mxu1  ;;  %v802_v58 = vpop.f32.mrb[23].mxu0 }
 0x219   :  { %v757_v59 = vpack.c.bf16 %v745_v57, %v742_v48  ;;  %v814_v60 = vpack.c.bf16 %v802_v58, %v799_v49  ;;  %665 = vadd.xlane.f32.xlu1 %v664_v54 }
 0x21b   :  { %2424 = vmatpush3.bf16.msra.mxu0 %v757_v59  ;;  %2430 = vmatpush3.bf16.msra.mxu1 %v814_v60 }
 0x21c   :  { %2441 = vmatprep.subr.bf16.mxu1 %v2681_v15  ;;  %2435 = vmatprep.subr.bf16.mxu0 %v2681_v15 }
 0x21d   :  { %v2421_v63 = vpop.f32.mrb[20].mxu1 }
 0x21e   :  { %v856_v0 = vpop.f32.mrb[21].mxu1  ;;  %2426 = vmatmul.mubr.msk.bf16.vlgmr.msra.gmra.mrb[24].mxu0 %vm159_vm1, %v693_v61  ;;  %2432 = vmatmul.mubr.msk.bf16.vlgmr.msra.gmra.mrb[24].mxu1 %vm159_vm1, %v694_v62 }
 0x21f   :  { %v2422_v1 = vpop.f32.mrb[22].mxu1  ;;  %2442 = vmatpush3.bf16.msra.mxu1 %v758_v55  ;;  %2437 = vmatprep.mubr.msk.bf16.mxu0 %vm2682_vm5, %v2681_v15 }
 0x220   :  { %v872_v2 = vpack.c.bf16 %v2422_v1, %v2421_v63  ;;  %v859_v3 = vpop.f32.mrb[23].mxu1  ;;  %2443 = vmatprep.mubr.msk.bf16.mxu1 %vm2682_vm5, %v2681_v15  ;;  %2453 = vmatprep.subr.bf16.mxu1 %v2681_v15 }
 0x221   :  { %v871_v4 = vpack.c.bf16 %v859_v3, %v856_v0 }
 0x223   :  { %2436 = vmatpush3.bf16.msra.mxu0 %v871_v4 }
 0x224   :  { %2447 = vmatprep.subr.bf16.mxu0 %v2681_v15 }
 0x226   :  { %2438 = vmatmul.mubr.msk.bf16.vlgmr.msra.gmra.mrb[28].mxu0 %vm159_vm1, %v699_v5  ;;  %2444 = vmatmul.mubr.msk.bf16.vlgmr.msra.gmra.mrb[28].mxu1 %vm159_vm1, %v693_v61 }
 0x227   :  { %2454 = vmatpush3.bf16.msra.mxu1 %v872_v2  ;;  %2448 = vmatpush3.bf16.msra.mxu0 %v815_v56 }
 0x228   :  { %2449 = vmatprep.mubr.msk.bf16.mxu0 %vm2682_vm5, %v2681_v15  ;;  %2455 = vmatprep.mubr.msk.bf16.mxu1 %vm2682_vm5, %v2681_v15 }
 0x229   :  { %2459 = vmatprep.subr.bf16.mxu0 %v2613_v6  ;;  %2465 = vmatprep.subr.bf16.mxu1 %v2614_v7 }
 0x22e   :  { %2450 = vmatmul.mubr.msk.bf16.vlgmr.msra.gmra.mrb[32].mxu0 %vm159_vm1, %v694_v62  ;;  %2456 = vmatmul.mubr.msk.bf16.vlgmr.msra.gmra.mrb[32].mxu1 %vm159_vm1, %v699_v5 }
 0x22f   :  { %2460 = vmatpush3.bf16.msra.mxu0 %v2613_v6  ;;  %2466 = vmatpush3.bf16.msra.mxu1 %v2614_v7 }
 0x230   :  { %2461 = vmatprep.mubr.msk.bf16.mxu0 %vm159_vm1, %v2879_v20  ;;  %2467 = vmatprep.mubr.msk.bf16.mxu1 %vm159_vm1, %v2879_v20 }
 0x231   :  { %2471 = vmatprep.subr.bf16.mxu0 %v2615_v8  ;;  %2477 = vmatprep.subr.bf16.mxu1 %v2681_v15 }
 0x236   :  { %2462 = vmatmul.mubr.msk.bf16.vlgmr.msra.gmra.mrb[36].mxu0 %vm159_vm1, %v2883_v24  ;;  %2468 = vmatmul.mubr.msk.bf16.vlgmr.msra.gmra.mrb[36].mxu1 %vm159_vm1, %v2883_v24 }
 0x237   :  { %2472 = vmatpush3.bf16.msra.mxu0 %v2615_v8  ;;  %2473 = vmatprep.mubr.msk.bf16.mxu0 %vm159_vm1, %v2881_v23 }
 0x238   :  { %2483 = vmatprep.subr.bf16.mxu0 %v2681_v15  ;;  %2479 = vmatprep.mubr.msk.bf16.mxu1 %vm2682_vm5, %v2681_v15 }
 0x23e   :  { %2474 = vmatmul.mubr.msk.bf16.vlgmr.msra.gmra.mrb[40].mxu0 %vm159_vm1, %v2898_v27 }
 0x23f   :  { %2485 = vmatprep.mubr.msk.bf16.mxu0 %vm2682_vm5, %v2681_v15 }
 0x29a   :  { %v515_v9 = vpop.xlane.xlu0 %514 }
 0x29b   :  { %v516_v10 = vrot.slane %v515_v9, 4 }
 0x29d   :  { %v517_v11 = vadd.f32 %v516_v10, %v515_v9 }
 0x29e   :  { %v502_v12 = vpop.xlane.xlu0 %501 }
 0x29f   :  { %v518_v13 = vrot.slane %v517_v11, 2  ;;  %v503_v14 = vrot.slane %v502_v12, 4 }
 0x2a1   :  { %v504_v16 = vadd.f32 %v503_v14, %v502_v12  ;;  %v519_v18 = vadd.f32 %v518_v13, %v517_v11 }
 0x2a2   :  { %v679_v17 = vpop.xlane.xlu1 %678 }
 0x2a3   :  { %v505_v19 = vrot.slane %v504_v16, 2  ;;  %v680_v21 = vrot.slane %v679_v17, 4  ;;  %v520_v28 = vrot.slane %v519_v18, 1 }
 0x2a5   :  { %v681_v22 = vadd.f32 %v680_v21, %v679_v17  ;;  %v506_v25 = vadd.f32 %v505_v19, %v504_v16  ;;  %v521_v34 = vadd.f32 %v520_v28, %v519_v18 }
 0x2a6   :  { %v666_v26 = vpop.xlane.xlu1 %665 }
 0x2a7   :  { %v682_v29 = vrot.slane %v681_v22, 2  ;;  %v667_v30 = vrot.slane %v666_v26, 4  ;;  %v507_v31 = vrot.slane %v506_v25, 1 }
 0x2a9   :  { %v668_v32 = vadd.f32 %v667_v30, %v666_v26  ;;  %v508_v33 = vadd.f32 %v507_v31, %v506_v25  ;;  %v683_v35 = vadd.f32 %v682_v29, %v681_v22 }
 0x2ab   :  { %v669_v36 = vrot.slane %v668_v32, 2  ;;  %2567 = vpush %v508_v33  ;;  %v684_v38 = vrot.slane %v683_v35, 1  ;;  %v1187_v33 = vld [vmem:[%s3145_s14] sm:$0x3] }
 0x2ac   :  { %2569 = vpush %v521_v34  ;;  %v1188_v34 = vld [vmem:[%s3146_s15] sm:$0x3] }
 0x2ad   :  { %v670_v37 = vadd.f32 %v669_v36, %v668_v32  ;;  %v685_v41 = vadd.f32 %v684_v38, %v683_v35 }
 0x2af   :  { %v671_v39 = vrot.slane %v670_v37, 1 }
 0x2b1   :  { %v672_v40 = vadd.f32 %v671_v39, %v670_v37 }
 0x2b3   :  { %2571 = vpush %v672_v40 }
 0x2b4   :  { %2573 = vpush %v685_v41  ;;  %v1193_v41 = vld [vmem:[%s3149_s18] sm:$0x3] }
 0x2dc   :  { %s2568_s16 = spop %2567 }
 0x2dd   :  { %s2570_s19 = spop %2569 }
 0x2de   :  { %s523_s1 = smul.f32 2.0, %s2570_s19 }
 0x2e4   :  { %s2572_s27 = spop %2571 }
 0x2e5   :  { %s674_s7 = sadd.f32 %s2572_s27, %s2568_s16  ;;  %s2574_s4 = spop %2573 }
 0x2e6   :  { %s687_s9 = smul.f32 2.0, %s2574_s4 }
 0x2e7   :  { %690 = sst [smem:[#allocation7]] %s674_s7 }
 0x2e8   :  { %s688_s30 = sadd.f32 %s687_s9, %s523_s1 }
 0x2ea   :  { %692 = sst [smem:[#allocation7 + $0x4]] %s688_s30 }
 0x2f1   :  { %v910_v42 = vpop.f32.mrb[24].mxu0  ;;  %v953_v43 = vpop.f32.mrb[24].mxu1 }
 0x2f2   :  { %v1005_v44 = vand.u32 2147483647, %v910_v42  ;;  %v1006_v45 = vand.u32 2147483647, %v953_v43  ;;  %v2427_v46 = vpop.f32.mrb[25].mxu0  ;;  %v2433_v47 = vpop.f32.mrb[25].mxu1 }
 0x2f3   :  { %v913_v48 = vpop.f32.mrb[26].mxu0  ;;  %v956_v49 = vpop.f32.mrb[26].mxu1  ;;  %v2616_v42 = vld [vmem:[%s3154_s23] sm:$0xff]  }
 0x2f4   :  { %v1007_v50 = vadd.f32 %v1006_v45, %v1005_v44  ;;  %v2428_v51 = vpop.f32.mrb[27].mxu0  ;;  %v2434_v52 = vpop.f32.mrb[27].mxu1  ;;  %v2617_v43 = vld [vmem:[%s3153_s22] sm:$0xff]  }
 0x2f5   :  { %v2618_v44 = vld [vmem:[%s3156_s25] sm:$0xff]  }
 0x2f9   :  { %v996_v53 = vpop.f32.mrb[28].mxu0  ;;  %v1067_v54 = vpop.f32.mrb[28].mxu1 }
 0x2fa   :  { %vm1002_vm11 = vcmp.lt.f32.partialorder %v996_v53, 0.5  ;;  %v2439_v55 = vpop.f32.mrb[29].mxu0  ;;  %v2445_v56 = vpop.f32.mrb[29].mxu1  ;;  %v1156_v1 = vand.u32 2147483647, %v1067_v54 }
 0x2fb   :  { %v999_v57 = vpop.f32.mrb[30].mxu0  ;;  %v1070_v58 = vpop.f32.mrb[30].mxu1  ;;  %v2228_v59 = vsel %vm1002_vm11, 1.0, %v2681_v15 }
 0x2fc   :  { %v2440_v60 = vpop.f32.mrb[31].mxu0  ;;  %v2446_v61 = vpop.f32.mrb[31].mxu1  ;;  %v1021_v62 = vsel %vm1009_vm10, %v2228_v59, 0.0  ;;  %v1008_v63 = vmul.f32 %v2228_v59, %v1007_v50 }
 0x2fd   :  { %1022 = vadd.xlane.f32.xlu1 %v1021_v62 }
 0x2fe   :  { %v1010_v0 = vsel %vm1009_vm10, %v1008_v63, 0.0 }
 0x2ff   :  { %1011 = vadd.xlane.f32.xlu0 %v1010_v0 }
 0x301   :  { %v1107_v2 = vpop.f32.mrb[32].mxu0  ;;  %v1147_v3 = vpop.f32.mrb[32].mxu1 }
 0x302   :  { %v1157_v4 = vand.u32 2147483647, %v1107_v2  ;;  %vm1153_vm12 = vcmp.lt.f32.partialorder %v1147_v3, 0.5  ;;  %v2451_v5 = vpop.f32.mrb[33].mxu0  ;;  %v2457_v6 = vpop.f32.mrb[33].mxu1 }
 0x303   :  { %v1110_v7 = vpop.f32.mrb[34].mxu0  ;;  %v1150_v8 = vpop.f32.mrb[34].mxu1  ;;  %v2232_v9 = vsel %vm1153_vm12, 1.0, %v2681_v15 }
 0x304   :  { %v1158_v10 = vadd.f32 %v1157_v4, %v1156_v1  ;;  %v2452_v11 = vpop.f32.mrb[35].mxu0  ;;  %v2458_v12 = vpop.f32.mrb[35].mxu1  ;;  %v1171_v13 = vsel %vm1009_vm10, %v2232_v9, 0.0 }
 0x305   :  { %1172 = vadd.xlane.f32.xlu1 %v1171_v13 }
 0x306   :  { %v1159_v14 = vmul.f32 %v2232_v9, %v1158_v10 }
 0x308   :  { %v1160_v16 = vsel %vm1009_vm10, %v1159_v14, 0.0 }
 0x309   :  { %v2469_v17 = vpop.f32.mrb[36].mxu1  ;;  %1161 = vadd.xlane.f32.xlu0 %v1160_v16  ;;  %v2463_v18 = vpop.f32.mrb[36].mxu0 }
 0x30a   :  { %v1236_v19 = vpop.f32.mrb[37].mxu0  ;;  %v1293_v21 = vpop.f32.mrb[37].mxu1 }
 0x30b   :  { %v2464_v22 = vpop.f32.mrb[38].mxu0  ;;  %v2470_v25 = vpop.f32.mrb[38].mxu1 }
 0x30c   :  { %v1252_v26 = vpack.c.bf16 %v2464_v22, %v2463_v18  ;;  %v1309_v28 = vpack.c.bf16 %v2470_v25, %v2469_v17  ;;  %v1239_v29 = vpop.f32.mrb[39].mxu0  ;;  %v1296_v30 = vpop.f32.mrb[39].mxu1 }
 0x30d   :  { %v1251_v31 = vpack.c.bf16 %v1239_v29, %v1236_v19  ;;  %v1308_v32 = vpack.c.bf16 %v1296_v30, %v1293_v21 }
 0x30f   :  { %2478 = vmatpush3.bf16.msra.mxu1 %v1251_v31  ;;  %2484 = vmatpush3.bf16.msra.mxu0 %v1308_v32 }
 0x310   :  { %2495 = vmatprep.subr.bf16.mxu0 %v2681_v15  ;;  %2489 = vmatprep.subr.bf16.mxu1 %v2681_v15 }
 0x311   :  { %v2475_v35 = vpop.f32.mrb[40].mxu0 }
 0x312   :  { %v1350_v36 = vpop.f32.mrb[41].mxu0  ;;  %2480 = vmatmul.mubr.msk.bf16.vlgmr.msra.gmra.mrb[40].mxu1 %vm159_vm1, %v1187_v33  ;;  %2486 = vmatmul.mubr.msk.bf16.vlgmr.msra.gmra.mrb[44].mxu0 %vm159_vm1, %v1188_v34 }
 0x313   :  { %v2476_v37 = vpop.f32.mrb[42].mxu0  ;;  %2496 = vmatpush3.bf16.msra.mxu0 %v1252_v26  ;;  %2491 = vmatprep.mubr.msk.bf16.mxu1 %vm2682_vm5, %v2681_v15 }
 0x314   :  { %v1366_v38 = vpack.c.bf16 %v2476_v37, %v2475_v35  ;;  %v1353_v39 = vpop.f32.mrb[43].mxu0  ;;  %2497 = vmatprep.mubr.msk.bf16.mxu0 %vm2682_vm5, %v2681_v15  ;;  %2507 = vmatprep.subr.bf16.mxu0 %v2681_v15 }
 0x315   :  { %v1365_v40 = vpack.c.bf16 %v1353_v39, %v1350_v36 }
 0x317   :  { %2490 = vmatpush3.bf16.msra.mxu1 %v1365_v40 }
 0x318   :  { %2501 = vmatprep.subr.bf16.mxu1 %v2681_v15 }
 0x31a   :  { %2492 = vmatmul.mubr.msk.bf16.vlgmr.msra.gmra.mrb[44].mxu1 %vm159_vm1, %v1193_v41  ;;  %2498 = vmatmul.mubr.msk.bf16.vlgmr.msra.gmra.mrb[48].mxu0 %vm159_vm1, %v1187_v33 }
 0x31b   :  { %2508 = vmatpush3.bf16.msra.mxu0 %v1366_v38  ;;  %2502 = vmatpush3.bf16.msra.mxu1 %v1309_v28 }
 0x31c   :  { %2503 = vmatprep.mubr.msk.bf16.mxu1 %vm2682_vm5, %v2681_v15  ;;  %2509 = vmatprep.mubr.msk.bf16.mxu0 %vm2682_vm5, %v2681_v15 }
 0x31d   :  { %2513 = vmatprep.subr.bf16.mxu1 %v2616_v42  ;;  %2519 = vmatprep.subr.bf16.mxu0 %v2617_v43 }
 0x322   :  { %2504 = vmatmul.mubr.msk.bf16.vlgmr.msra.gmra.mrb[48].mxu1 %vm159_vm1, %v1188_v34  ;;  %2510 = vmatmul.mubr.msk.bf16.vlgmr.msra.gmra.mrb[52].mxu0 %vm159_vm1, %v1193_v41 }
 0x323   :  { %2514 = vmatpush3.bf16.msra.mxu1 %v2616_v42  ;;  %2520 = vmatpush3.bf16.msra.mxu0 %v2617_v43 }
 0x324   :  { %2515 = vmatprep.mubr.msk.bf16.mxu1 %vm159_vm1, %v2879_v20  ;;  %2521 = vmatprep.mubr.msk.bf16.mxu0 %vm159_vm1, %v2879_v20 }
 0x325   :  { %2525 = vmatprep.subr.bf16.mxu1 %v2618_v44  ;;  %2531 = vmatprep.subr.bf16.mxu0 %v2681_v15 }
 0x32a   :  { %2516 = vmatmul.mubr.msk.bf16.vlgmr.msra.gmra.mrb[52].mxu1 %vm159_vm1, %v2883_v24  ;;  %2522 = vmatmul.mubr.msk.bf16.vlgmr.msra.gmra.mrb[56].mxu0 %vm159_vm1, %v2883_v24 }
 0x32b   :  { %2526 = vmatpush3.bf16.msra.mxu1 %v2618_v44  ;;  %2527 = vmatprep.mubr.msk.bf16.mxu1 %vm159_vm1, %v2881_v23 }
 0x32c   :  { %2537 = vmatprep.subr.bf16.mxu1 %v2681_v15  ;;  %2533 = vmatprep.mubr.msk.bf16.mxu0 %vm2682_vm5, %v2681_v15 }
 0x332   :  { %2528 = vmatmul.mubr.msk.bf16.vlgmr.msra.gmra.mrb[56].mxu1 %vm159_vm1, %v2898_v27 }
 0x333   :  { %2539 = vmatprep.mubr.msk.bf16.mxu1 %vm2682_vm5, %v2681_v15 }
 0x38a   :  { %v1023_v20 = vpop.xlane.xlu1 %1022 }
 0x38b   :  { %v1024_v45 = vrot.slane %v1023_v20, 4 }
 0x38c   :  { %v1012_v46 = vpop.xlane.xlu0 %1011 }
 0x38d   :  { %v1025_v47 = vadd.f32 %v1024_v45, %v1023_v20  ;;  %v1013_v24 = vrot.slane %v1012_v46, 4 }
 0x38f   :  { %v1026_v48 = vrot.slane %v1025_v47, 2  ;;  %v1014_v49 = vadd.f32 %v1013_v24, %v1012_v46 }
 0x391   :  { %v1015_v50 = vrot.slane %v1014_v49, 2  ;;  %v1027_v23 = vadd.f32 %v1026_v48, %v1025_v47 }
 0x392   :  { %v1173_v51 = vpop.xlane.xlu1 %1172 }
 0x393   :  { %v1174_v52 = vrot.slane %v1173_v51, 4  ;;  %v1016_v53 = vadd.f32 %v1015_v50, %v1014_v49  ;;  %v1028_v54 = vrot.slane %v1027_v23, 1 }
 0x395   :  { %v1175_v55 = vadd.f32 %v1174_v52, %v1173_v51  ;;  %v1017_v56 = vrot.slane %v1016_v53, 1  ;;  %v1029_v60 = vadd.f32 %v1028_v54, %v1027_v23 }
 0x396   :  { %v1162_v57 = vpop.xlane.xlu0 %1161 }
 0x397   :  { %v1176_v27 = vrot.slane %v1175_v55, 2  ;;  %v1163_v58 = vrot.slane %v1162_v57, 4  ;;  %v1018_v59 = vadd.f32 %v1017_v56, %v1016_v53 }
 0x399   :  { %v1164_v61 = vadd.f32 %v1163_v58, %v1162_v57  ;;  %2575 = vpush %v1018_v59  ;;  %v1177_v62 = vadd.f32 %v1176_v27, %v1175_v55  ;;  %v1681_v57 = vld [vmem:[%s3151_s20] sm:$0x1] }
 0x39a   :  { %2577 = vpush %v1029_v60  ;;  %v1682_v27 = vld [vmem:[%s3152_s21] sm:$0x1] }
 0x39b   :  { %v1165_v63 = vrot.slane %v1164_v61, 2  ;;  %v1178_v1 = vrot.slane %v1177_v62, 1 }
 0x39d   :  { %v1166_v0 = vadd.f32 %v1165_v63, %v1164_v61  ;;  %v1179_v4 = vadd.f32 %v1178_v1, %v1177_v62 }
 0x39f   :  { %v1167_v2 = vrot.slane %v1166_v0, 1 }
 0x3a1   :  { %v1168_v3 = vadd.f32 %v1167_v2, %v1166_v0  ;;  %v1687_v0 = vld [vmem:[%s3155_s24] sm:$0x1] }
 0x3a3   :  { %2579 = vpush %v1168_v3 }
 0x3a4   :  { %2581 = vpush %v1179_v4 }
 0x3ca   :  { %s2576_s22 = spop %2575 }
 0x3cb   :  { %s2578_s25 = spop %2577 }
 0x3cc   :  { %s1031_s29 = smul.f32 2.0, %s2578_s25 }
 0x3d4   :  { %s2580_s10 = spop %2579 }
 0x3d5   :  { %s1170_s6 = sadd.f32 %s2580_s10, %s2576_s22  ;;  %s2582_s12 = spop %2581 }
 0x3d6   :  { %s1181_s17 = smul.f32 2.0, %s2582_s12 }
 0x3d7   :  { %1184 = sst [smem:[#allocation7 + $0x1]] %s1170_s6 }
 0x3d8   :  { %s1182_s16 = sadd.f32 %s1181_s17, %s1031_s29  ;;  %s2663_s29 = scalar_lea.hbm %s3157_s26, 16 }
 0x3d9   :  { %p2664_p2 = scmp.ne.s32.totalorder %s3157_s26, %s2663_s29  ;;  %p2667_p3 = scmp.lt.u32.totalorder %s2663_s29, %s3157_s26 }
 0x3da   :  { %1186 = sst [smem:[#allocation7 + $0x5]] %s1182_s16 }
 0x3db   :  { %p2669_p4 = pnand %p2667_p3, %p2664_p2 }
 0x3e5   :  { %v1404_v5 = vpop.f32.mrb[40].mxu1  ;;  %v1447_v6 = vpop.f32.mrb[44].mxu0 }
 0x3e6   :  { %v1499_v7 = vand.u32 2147483647, %v1404_v5  ;;  %v1500_v8 = vand.u32 2147483647, %v1447_v6  ;;  %v2481_v9 = vpop.f32.mrb[41].mxu1  ;;  %v2487_v10 = vpop.f32.mrb[45].mxu0 }
 0x3e7   :  { %v1407_v11 = vpop.f32.mrb[42].mxu1  ;;  %v1450_v12 = vpop.f32.mrb[46].mxu0 }
 0x3e8   :  { %v1501_v13 = vadd.f32 %v1500_v8, %v1499_v7  ;;  %v2482_v14 = vpop.f32.mrb[43].mxu1  ;;  %v2488_v16 = vpop.f32.mrb[47].mxu0 }
 0x3ed   :  { %v1490_v17 = vpop.f32.mrb[44].mxu1  ;;  %v1561_v18 = vpop.f32.mrb[48].mxu0 }
 0x3ee   :  { %vm1496_vm14 = vcmp.lt.f32.partialorder %v1490_v17, 0.5  ;;  %v2493_v19 = vpop.f32.mrb[45].mxu1  ;;  %v2499_v21 = vpop.f32.mrb[49].mxu0  ;;  %v1650_v33 = vand.u32 2147483647, %v1561_v18 }
 0x3ef   :  { %v1493_v22 = vpop.f32.mrb[46].mxu1  ;;  %v1564_v25 = vpop.f32.mrb[50].mxu0  ;;  %v2245_v26 = vsel %vm1496_vm14, 1.0, %v2681_v15 }
 0x3f0   :  { %v2494_v28 = vpop.f32.mrb[47].mxu1  ;;  %v2500_v29 = vpop.f32.mrb[51].mxu0  ;;  %v1515_v30 = vsel %vm1503_vm13, %v2245_v26, 0.0  ;;  %v1502_v31 = vmul.f32 %v2245_v26, %v1501_v13 }
 0x3f1   :  { %1516 = vadd.xlane.f32.xlu1 %v1515_v30 }
 0x3f2   :  { %v1504_v32 = vsel %vm1503_vm13, %v1502_v31, 0.0 }
 0x3f3   :  { %1505 = vadd.xlane.f32.xlu0 %v1504_v32 }
 0x3f5   :  { %v1601_v34 = vpop.f32.mrb[48].mxu1  ;;  %v1641_v35 = vpop.f32.mrb[52].mxu0 }
 0x3f6   :  { %v1651_v36 = vand.u32 2147483647, %v1601_v34  ;;  %vm1647_vm15 = vcmp.lt.f32.partialorder %v1641_v35, 0.5  ;;  %v2505_v37 = vpop.f32.mrb[49].mxu1  ;;  %v2511_v38 = vpop.f32.mrb[53].mxu0 }
 0x3f7   :  { %v1604_v39 = vpop.f32.mrb[50].mxu1  ;;  %v1644_v40 = vpop.f32.mrb[54].mxu0  ;;  %v2249_v41 = vsel %vm1647_vm15, 1.0, %v2681_v15 }
 0x3f8   :  { %v1652_v42 = vadd.f32 %v1651_v36, %v1650_v33  ;;  %v2506_v43 = vpop.f32.mrb[51].mxu1  ;;  %v2512_v44 = vpop.f32.mrb[55].mxu0  ;;  %v1665_v20 = vsel %vm1503_vm13, %v2249_v41, 0.0 }
 0x3f9   :  { %1666 = vadd.xlane.f32.xlu1 %v1665_v20 }
 0x3fa   :  { %v1653_v45 = vmul.f32 %v2249_v41, %v1652_v42 }
 0x3fc   :  { %v1654_v46 = vsel %vm1503_vm13, %v1653_v45, 0.0 }
 0x3fd   :  { %v2523_v47 = vpop.f32.mrb[56].mxu0  ;;  %1655 = vadd.xlane.f32.xlu0 %v1654_v46  ;;  %v2517_v24 = vpop.f32.mrb[52].mxu1 }
 0x3fe   :  { %v1730_v48 = vpop.f32.mrb[53].mxu1  ;;  %v1787_v49 = vpop.f32.mrb[57].mxu0 }
 0x3ff   :  { %v2518_v50 = vpop.f32.mrb[54].mxu1  ;;  %v2524_v23 = vpop.f32.mrb[58].mxu0 }
 0x400   :  { %v1746_v51 = vpack.c.bf16 %v2518_v50, %v2517_v24  ;;  %v1803_v52 = vpack.c.bf16 %v2524_v23, %v2523_v47  ;;  %v1733_v53 = vpop.f32.mrb[55].mxu1  ;;  %v1790_v54 = vpop.f32.mrb[59].mxu0 }
 0x401   :  { %v1745_v55 = vpack.c.bf16 %v1733_v53, %v1730_v48  ;;  %v1802_v56 = vpack.c.bf16 %v1790_v54, %v1787_v49 }
 0x403   :  { %2532 = vmatpush3.bf16.msra.mxu0 %v1745_v55  ;;  %2538 = vmatpush3.bf16.msra.mxu1 %v1802_v56 }
 0x404   :  { %2549 = vmatprep.subr.bf16.mxu1 %v2681_v15  ;;  %2543 = vmatprep.subr.bf16.mxu0 %v2681_v15 }
 0x405   :  { %v2529_v58 = vpop.f32.mrb[56].mxu1 }
 0x406   :  { %v1844_v59 = vpop.f32.mrb[57].mxu1  ;;  %2534 = vmatmul.mubr.msk.bf16.vlgmr.msra.gmra.mrb[60].mxu0 %vm159_vm1, %v1681_v57  ;;  %2540 = vmatmul.mubr.msk.bf16.vlgmr.msra.gmra.mrb[60].mxu1 %vm159_vm1, %v1682_v27 }
 0x407   :  { %v2530_v60 = vpop.f32.mrb[58].mxu1  ;;  %2550 = vmatpush3.bf16.msra.mxu1 %v1746_v51  ;;  %2545 = vmatprep.mubr.msk.bf16.mxu0 %vm2682_vm5, %v2681_v15 }
 0x408   :  { %v1860_v61 = vpack.c.bf16 %v2530_v60, %v2529_v58  ;;  %v1847_v62 = vpop.f32.mrb[59].mxu1  ;;  %2551 = vmatprep.mubr.msk.bf16.mxu1 %vm2682_vm5, %v2681_v15  ;;  %2561 = vmatprep.subr.bf16.mxu1 %v2681_v15 }
 0x409   :  { %v1859_v63 = vpack.c.bf16 %v1847_v62, %v1844_v59 }
 0x40b   :  { %2544 = vmatpush3.bf16.msra.mxu0 %v1859_v63 }
 0x40c   :  { %2555 = vmatprep.subr.bf16.mxu0 %v2681_v15 }
 0x40e   :  { %2546 = vmatmul.mubr.msk.bf16.vlgmr.msra.gmra.mrb[64].mxu0 %vm159_vm1, %v1687_v0  ;;  %2552 = vmatmul.mubr.msk.bf16.vlgmr.msra.gmra.mrb[64].mxu1 %vm159_vm1, %v1681_v57 }
 0x40f   :  { %2562 = vmatpush3.bf16.msra.mxu1 %v1860_v61  ;;  %2556 = vmatpush3.bf16.msra.mxu0 %v1803_v52 }
 0x410   :  { %2557 = vmatprep.mubr.msk.bf16.mxu0 %vm2682_vm5, %v2681_v15  ;;  %2563 = vmatprep.mubr.msk.bf16.mxu1 %vm2682_vm5, %v2681_v15 }
 0x416   :  { %2558 = vmatmul.mubr.msk.bf16.vlgmr.msra.gmra.mrb[68].mxu0 %vm159_vm1, %v1682_v27  ;;  %2564 = vmatmul.mubr.msk.bf16.vlgmr.msra.gmra.mrb[68].mxu1 %vm159_vm1, %v1687_v0 }
 0x47e   :  { %v1517_v1 = vpop.xlane.xlu1 %1516 }
 0x47f   :  { %v1518_v2 = vrot.slane %v1517_v1, 4 }
 0x480   :  { %v1506_v3 = vpop.xlane.xlu0 %1505 }
 0x481   :  { %v1519_v4 = vadd.f32 %v1518_v2, %v1517_v1  ;;  %v1507_v5 = vrot.slane %v1506_v3, 4 }
 0x483   :  { %v1520_v6 = vrot.slane %v1519_v4, 2  ;;  %v1508_v7 = vadd.f32 %v1507_v5, %v1506_v3 }
 0x485   :  { %v1509_v8 = vrot.slane %v1508_v7, 2  ;;  %v1521_v9 = vadd.f32 %v1520_v6, %v1519_v4 }
 0x486   :  { %v1667_v10 = vpop.xlane.xlu1 %1666 }
 0x487   :  { %v1668_v11 = vrot.slane %v1667_v10, 4  ;;  %v1510_v12 = vadd.f32 %v1509_v8, %v1508_v7  ;;  %v1522_v13 = vrot.slane %v1521_v9, 1 }
 0x489   :  { %v1669_v14 = vadd.f32 %v1668_v11, %v1667_v10  ;;  %v1511_v16 = vrot.slane %v1510_v12, 1  ;;  %v1523_v22 = vadd.f32 %v1522_v13, %v1521_v9 }
 0x48a   :  { %v1656_v17 = vpop.xlane.xlu0 %1655 }
 0x48b   :  { %v1670_v18 = vrot.slane %v1669_v14, 2  ;;  %v1657_v19 = vrot.slane %v1656_v17, 4  ;;  %v1512_v21 = vadd.f32 %v1511_v16, %v1510_v12 }
 0x48d   :  { %v1658_v25 = vadd.f32 %v1657_v19, %v1656_v17  ;;  %2583 = vpush %v1512_v21  ;;  %v1671_v26 = vadd.f32 %v1670_v18, %v1669_v14 }
 0x48e   :  { %2585 = vpush %v1523_v22 }
 0x48f   :  { %v1659_v28 = vrot.slane %v1658_v25, 2  ;;  %v1672_v30 = vrot.slane %v1671_v26, 1 }
 0x491   :  { %v1660_v29 = vadd.f32 %v1659_v28, %v1658_v25  ;;  %v1673_v33 = vadd.f32 %v1672_v30, %v1671_v26 }
 0x493   :  { %v1661_v31 = vrot.slane %v1660_v29, 1 }
 0x495   :  { %v1662_v32 = vadd.f32 %v1661_v31, %v1660_v29 }
 0x497   :  { %2587 = vpush %v1662_v32 }
 0x498   :  { %2589 = vpush %v1673_v33 }
 0x4be   :  { %s2584_s24 = spop %2583 }
 0x4bf   :  { %s2586_s4 = spop %2585 }
 0x4c0   :  { %s1525_s9 = smul.f32 2.0, %s2586_s4 }
 0x4c8   :  { %s2588_s30 = spop %2587 }
 0x4c9   :  { %s1664_s2 = sadd.f32 %s2588_s30, %s2584_s24  ;;  %s2590_s5 = spop %2589 }
 0x4ca   :  { %s1675_s28 = smul.f32 2.0, %s2590_s5 }
 0x4cb   :  { %1678 = sst [smem:[#allocation7 + $0x2]] %s1664_s2 }
 0x4cc   :  { %s1676_s8 = sadd.f32 %s1675_s28, %s1525_s9 }
 0x4ce   :  { %1680 = sst [smem:[#allocation7 + $0x6]] %s1676_s8 }
 0x4d9   :  { %v1898_v34 = vpop.f32.mrb[60].mxu0  ;;  %v1941_v35 = vpop.f32.mrb[60].mxu1 }
 0x4da   :  { %v1993_v36 = vand.u32 2147483647, %v1898_v34  ;;  %v2535_v37 = vpop.f32.mrb[61].mxu0  ;;  %v1994_v38 = vand.u32 2147483647, %v1941_v35  ;;  %v2541_v39 = vpop.f32.mrb[61].mxu1 }
 0x4db   :  { %v1901_v40 = vpop.f32.mrb[62].mxu0  ;;  %v1944_v41 = vpop.f32.mrb[62].mxu1 }
 0x4dc   :  { %v1995_v42 = vadd.f32 %v1994_v38, %v1993_v36  ;;  %v2536_v43 = vpop.f32.mrb[63].mxu0  ;;  %v2542_v44 = vpop.f32.mrb[63].mxu1 }
 0x4e1   :  { %v1984_v20 = vpop.f32.mrb[64].mxu0  ;;  %v2055_v45 = vpop.f32.mrb[64].mxu1 }
 0x4e2   :  { %vm1990_vm1 = vcmp.lt.f32.partialorder %v1984_v20, 0.5  ;;  %v2547_v46 = vpop.f32.mrb[65].mxu0  ;;  %v2553_v47 = vpop.f32.mrb[65].mxu1  ;;  %v2144_v54 = vand.u32 2147483647, %v2055_v45 }
 0x4e3   :  { %v2262_v24 = vsel %vm1990_vm1, 1.0, %v2681_v15  ;;  %v1987_v48 = vpop.f32.mrb[66].mxu0  ;;  %v2058_v49 = vpop.f32.mrb[66].mxu1 }
 0x4e4   :  { %v2009_v50 = vsel %vm1997_vm0, %v2262_v24, 0.0  ;;  %v2548_v23 = vpop.f32.mrb[67].mxu0  ;;  %v1996_v51 = vmul.f32 %v2262_v24, %v1995_v42  ;;  %v2554_v52 = vpop.f32.mrb[67].mxu1 }
 0x4e5   :  { %2010 = vadd.xlane.f32.xlu1 %v2009_v50 }
 0x4e6   :  { %v1998_v53 = vsel %vm1997_vm0, %v1996_v51, 0.0 }
 0x4e7   :  { %1999 = vadd.xlane.f32.xlu0 %v1998_v53 }
 0x4e9   :  { %v2095_v55 = vpop.f32.mrb[68].mxu0  ;;  %v2135_v56 = vpop.f32.mrb[68].mxu1 }
 0x4ea   :  { %v2145_v57 = vand.u32 2147483647, %v2095_v55  ;;  %vm2141_vm2 = vcmp.lt.f32.partialorder %v2135_v56, 0.5  ;;  %v2559_v27 = vpop.f32.mrb[69].mxu0  ;;  %v2565_v58 = vpop.f32.mrb[69].mxu1 }
 0x4eb   :  { %v2098_v59 = vpop.f32.mrb[70].mxu0  ;;  %v2266_v60 = vsel %vm2141_vm2, 1.0, %v2681_v15  ;;  %v2138_v61 = vpop.f32.mrb[70].mxu1 }
 0x4ec   :  { %v2146_v62 = vadd.f32 %v2145_v57, %v2144_v54  ;;  %v2159_v63 = vsel %vm1997_vm0, %v2266_v60, 0.0  ;;  %v2560_v0 = vpop.f32.mrb[71].mxu0  ;;  %v2566_v1 = vpop.f32.mrb[71].mxu1 }
 0x4ed   :  { %2160 = vadd.xlane.f32.xlu1 %v2159_v63 }
 0x4ee   :  { %v2147_v2 = vmul.f32 %v2266_v60, %v2146_v62 }
 0x4f0   :  { %v2148_v3 = vsel %vm1997_vm0, %v2147_v2, 0.0 }
 0x4f1   :  { %2149 = vadd.xlane.f32.xlu0 %v2148_v3 }
 0x572   :  { %v2011_v4 = vpop.xlane.xlu1 %2010 }
 0x573   :  { %v2012_v5 = vrot.slane %v2011_v4, 4 }
 0x574   :  { %v2000_v6 = vpop.xlane.xlu0 %1999 }
 0x575   :  { %v2013_v7 = vadd.f32 %v2012_v5, %v2011_v4  ;;  %v2001_v8 = vrot.slane %v2000_v6, 4 }
 0x577   :  { %v2014_v9 = vrot.slane %v2013_v7, 2  ;;  %v2002_v10 = vadd.f32 %v2001_v8, %v2000_v6 }
 0x579   :  { %v2003_v11 = vrot.slane %v2002_v10, 2  ;;  %v2015_v15 = vadd.f32 %v2014_v9, %v2013_v7 }
 0x57a   :  { %v2161_v12 = vpop.xlane.xlu1 %2160 }
 0x57b   :  { %v2162_v13 = vrot.slane %v2161_v12, 4  ;;  %v2004_v14 = vadd.f32 %v2003_v11, %v2002_v10  ;;  %v2016_v16 = vrot.slane %v2015_v15, 1 }
 0x57d   :  { %v2163_v17 = vadd.f32 %v2162_v13, %v2161_v12  ;;  %v2005_v18 = vrot.slane %v2004_v14, 1  ;;  %v2017_v26 = vadd.f32 %v2016_v16, %v2015_v15 }
 0x57e   :  { %v2150_v19 = vpop.xlane.xlu0 %2149 }
 0x57f   :  { %v2164_v21 = vrot.slane %v2163_v17, 2  ;;  %v2151_v22 = vrot.slane %v2150_v19, 4  ;;  %v2006_v25 = vadd.f32 %v2005_v18, %v2004_v14 }
 0x581   :  { %v2152_v28 = vadd.f32 %v2151_v22, %v2150_v19  ;;  %2591 = vpush %v2006_v25  ;;  %v2165_v29 = vadd.f32 %v2164_v21, %v2163_v17 }
 0x582   :  { %2593 = vpush %v2017_v26 }
 0x583   :  { %v2153_v30 = vrot.slane %v2152_v28, 2  ;;  %v2166_v32 = vrot.slane %v2165_v29, 1 }
 0x585   :  { %v2154_v31 = vadd.f32 %v2153_v30, %v2152_v28  ;;  %v2167_v35 = vadd.f32 %v2166_v32, %v2165_v29 }
 0x587   :  { %v2155_v33 = vrot.slane %v2154_v31, 1 }
 0x589   :  { %v2156_v34 = vadd.f32 %v2155_v33, %v2154_v31 }
 0x58b   :  { %2595 = vpush %v2156_v34 }
 0x58c   :  { %2597 = vpush %v2167_v35 }
 0x5b2   :  { %s2592_s14 = spop %2591 }
 0x5b3   :  { %s2594_s15 = spop %2593 }
 0x5b4   :  { %s2019_s11 = smul.f32 2.0, %s2594_s15 }
 0x5bc   :  { %s2596_s13 = spop %2595 }
 0x5bd   :  { %s2158_s0 = sadd.f32 %s2596_s13, %s2592_s14  ;;  %s2598_s3 = spop %2597 }
 0x5be   :  { %s2169_s18 = smul.f32 2.0, %s2598_s3 }
 0x5bf   :  { %2172 = sst [smem:[#allocation7 + $0x3]] %s2158_s0 }
 0x5c0   :  { %s2170_s23 = sadd.f32 %s2169_s18, %s2019_s11 }
 0x5c2   :  { %2174 = sst [smem:[#allocation7 + $0x7]] %s2170_s23 }
 0x5c3   :  { %2672 = shalt.err (!%p2669_p4)
}
 0x5c4   :  { %s2683_s16 = smov [#allocation7]  }
 0x5c5   :  { %2182 = dma.smem_to_hbm %s2683_s16, 16, %s3157_s26, [#allocation4]  }
 0x5c6   :  { %2677 = dma.done.wait [#allocation4], 16  }
 0x5c7   :  { %2678 = vsyncadd [#allocation4], 4294967280 }
 0x5c8   :  { %2186 = sfence }
 0x5c9   :  { %2187 = vsyncpa [#allocation3], 1 }
 0x5ca   :  { %2188 = vsyncpa [#allocation6], 1 }
 0x5cb   :  { %2189 = vsyncpa [#allocation4], 1 }

</bundles_post_ra>
